<compile_context>
chip_gen: v6e
topology: v6e:2x2x1
jax: 0.10.0
libtpu: 0.0.40
codegen_flags: <defaults>
</compile_context>

<pallas_src>
import jax
import jax.numpy as jnp
from jax.experimental import pallas as pl
from jax.experimental.pallas import tpu as pltpu

HIDDEN = 256
NEG_SLOPE = 0.01
EPS = 1e-5


def _round_up(x, m):
    return ((x + m - 1) // m) * m


def _cdiv(a, b):
    return (a + b - 1) // b


def _leaky_relu(x):
    return jnp.where(x > 0, x, NEG_SLOPE * x)


# --------------------------------------------------------------------------- #
# Kernel
# --------------------------------------------------------------------------- #
def resnet_kernel(x_ref, s0_ref, t0_ref,
                  w12_ref, b1_ref,
                  w2b_ref, b2_ref,
                  w3a_ref, w3b_ref, b3_ref,
                  w4a_ref, w4b_ref, b4_ref,
                  w5a_ref, w5b_ref, b5_ref,
                  out_ref):
    cdt = w12_ref.dtype                      # MXU operand dtype (bf16)
    H = HIDDEN

    # bn0 in f32 (precision fix), then cast to the MXU operand dtype.
    xn = (x_ref[...] * s0_ref[...] + t0_ref[...]).astype(cdt)

    # Fused dense1 + dense2[x-half]: one K=input_size MXU launch; split at
    # lane 256 (tile-aligned -> no VMEM copy).
    h12 = jnp.dot(xn, w12_ref[...], preferred_element_type=jnp.float32)
    x1 = _leaky_relu(h12[:, :H] + b1_ref[...])
    x1c = x1.astype(cdt)

    # dense2(cat[x, x1]) (bn2 folded) -> LeakyReLU
    h2 = (h12[:, H:]
          + jnp.dot(x1c, w2b_ref[...], preferred_element_type=jnp.float32)
          + b2_ref[...])
    x2 = _leaky_relu(h2)
    x2c = x2.astype(cdt)

    # dense3(cat[x1, x2]) (bn3 folded) -> LeakyReLU
    h3 = (jnp.dot(x1c, w3a_ref[...], preferred_element_type=jnp.float32)
          + jnp.dot(x2c, w3b_ref[...], preferred_element_type=jnp.float32)
          + b3_ref[...])
    x3 = _leaky_relu(h3)
    x3c = x3.astype(cdt)

    # dense4(cat[x2, x3]) (bn4 folded) -> LeakyReLU
    h4 = (jnp.dot(x2c, w4a_ref[...], preferred_element_type=jnp.float32)
          + jnp.dot(x3c, w4b_ref[...], preferred_element_type=jnp.float32)
          + b4_ref[...])
    x4 = _leaky_relu(h4)
    x4c = x4.astype(cdt)

    # dense5(cat[x3, x4]) — output columns padded to a lane-dense slab.
    out = (jnp.dot(x3c, w5a_ref[...], preferred_element_type=jnp.float32)
           + jnp.dot(x4c, w5b_ref[...], preferred_element_type=jnp.float32)
           + b5_ref[...])
    out_ref[...] = out.astype(out_ref.dtype)


# --------------------------------------------------------------------------- #
# Parameters (raw, PyTorch-equivalent shapes; W stored (in, out))
# --------------------------------------------------------------------------- #
def make_params(key, input_size, output_size, hidden=HIDDEN):
    ks = iter(jax.random.split(key, 64))
    p = {}

    def bn(prefix, n):
        p[prefix + "_gamma"] = jax.random.normal(next(ks), (n,), jnp.float32) * 0.1 + 1.0
        p[prefix + "_beta"] = jax.random.normal(next(ks), (n,), jnp.float32) * 0.1
        p[prefix + "_mean"] = jax.random.normal(next(ks), (n,), jnp.float32) * 0.1
        p[prefix + "_var"] = jax.random.uniform(next(ks), (n,), jnp.float32, 0.5, 1.5)

    def lin(prefix, fin, fout):
        p[prefix + "_w"] = jax.random.normal(next(ks), (fin, fout), jnp.float32) / jnp.sqrt(fin)
        p[prefix + "_b"] = jax.random.normal(next(ks), (fout,), jnp.float32) * 0.01

    bn("bn0", input_size)
    lin("d1", input_size, hidden); bn("bn1", hidden)
    lin("d2", input_size + hidden, hidden); bn("bn2", hidden)
    lin("d3", hidden + hidden, hidden); bn("bn3", hidden)
    lin("d4", hidden + hidden, hidden); bn("bn4", hidden)
    lin("d5", hidden + hidden, output_size)
    return p


def _bn_affine(p, prefix):
    s = p[prefix + "_gamma"] / jnp.sqrt(p[prefix + "_var"] + EPS)
    t = p[prefix + "_beta"] - p[prefix + "_mean"] * s
    return s, t


_FOLDED_ORDER = ("s0", "t0", "w12", "b1", "w2b", "b2",
                 "w3a", "w3b", "b3", "w4a", "w4b", "b4",
                 "w5a", "w5b", "b5")


def fold_params(p, input_size, output_size, hidden=HIDDEN,
                compute_dtype=jnp.bfloat16):
    """Fold eval-mode BN1..4 into dense weights/biases, keep bn0 as an f32
    in-kernel scale/shift, fuse (w1 | w2a) into one K=input_size operand,
    split cat-weights, pad dense5 columns to a lane-dense slab, and cast the
    matmul weights to compute_dtype (bf16)."""
    out_pad = _round_up(output_size, 128)
    assert output_size <= out_pad

    s0, t0 = _bn_affine(p, "bn0")
    s1, t1 = _bn_affine(p, "bn1")
    s2, t2 = _bn_affine(p, "bn2")
    s3, t3 = _bn_affine(p, "bn3")
    s4, t4 = _bn_affine(p, "bn4")

    w1, b1 = p["d1_w"], p["d1_b"]
    w2, b2 = p["d2_w"], p["d2_b"]
    w3, b3 = p["d3_w"], p["d3_b"]
    w4, b4 = p["d4_w"], p["d4_b"]
    w5, b5 = p["d5_w"], p["d5_b"]

    w2a, w2b = w2[:input_size], w2[input_size:]
    w3a, w3b = w3[:hidden], w3[hidden:]
    w4a, w4b = w4[:hidden], w4[hidden:]
    w5a, w5b = w5[:hidden], w5[hidden:]

    # dense1 / dense2[x-half]: bn1 / bn2 on output columns (bn0 stays in-kernel)
    w1f = w1 * s1[None, :]
    b1f = b1 * s1 + t1
    w2af = w2a * s2[None, :]
    w2bf = w2b * s2[None, :]
    b2f = b2 * s2 + t2
    w12 = jnp.concatenate([w1f, w2af], axis=1)        # (input_size, 2*hidden)

    # dense3 / dense4: output-column BN only
    w3af = w3a * s3[None, :]
    w3bf = w3b * s3[None, :]
    b3f = b3 * s3 + t3
    w4af = w4a * s4[None, :]
    w4bf = w4b * s4[None, :]
    b4f = b4 * s4 + t4

    # dense5: no BN, pad columns to the lane-dense slab
    pad = out_pad - output_size
    w5af = jnp.pad(w5a, ((0, 0), (0, pad)))
    w5bf = jnp.pad(w5b, ((0, 0), (0, pad)))
    b5f = jnp.pad(b5, ((0, pad),))

    cast = lambda w: w.astype(compute_dtype)
    return dict(
        s0=s0.reshape(1, -1), t0=t0.reshape(1, -1),          # f32, applied in-kernel
        w12=cast(w12), b1=b1f.reshape(1, -1),
        w2b=cast(w2bf), b2=b2f.reshape(1, -1),
        w3a=cast(w3af), w3b=cast(w3bf), b3=b3f.reshape(1, -1),
        w4a=cast(w4af), w4b=cast(w4bf), b4=b4f.reshape(1, -1),
        w5a=cast(w5af), w5b=cast(w5bf), b5=b5f.reshape(1, -1),
    )


# --------------------------------------------------------------------------- #
# Batch-tile selection
# --------------------------------------------------------------------------- #
def _choose_batch_tile(B, block_b):
    """Pick a batch tile that (a) caps at block_b, (b) yields grid >= 2 when
    the batch allows it (v7x megacore), and (c) keeps tail padding small for
    odd batch sizes instead of always padding to a full block."""
    B8 = _round_up(B, 8)
    grid = _cdiv(B8, block_b)
    if grid == 1 and B8 >= 16:
        grid = 2                                  # let both v7x TCs work
    BB = _round_up(_cdiv(B8, grid), 8)
    if BB >= 256:
        BB = _round_up(BB, 256)                   # clean MXU M-tiling for fat tiles
    grid = _cdiv(B8, BB)
    return BB, grid


# --------------------------------------------------------------------------- #
# Wrapper
# --------------------------------------------------------------------------- #
def resnet_forward(x, folded, input_size, output_size, hidden=HIDDEN,
                   block_b=1024, out_dtype=jnp.bfloat16):
    """Returns the padded (B_pad, out_pad) output slab.

    Only the first x.shape[0] rows and first output_size columns are real;
    padded batch rows contain bias-only garbage and padded columns are the
    zero-padded dense5 columns.  Consumers should either read the slab
    directly (preferred; avoids an extra HBM round-trip) or slice
    `out[:B, :output_size]` themselves.
    """
    B = x.shape[0]
    out_pad = _round_up(output_size, 128)

    BB, grid_n = _choose_batch_tile(B, block_b)
    B_pad = BB * grid_n
    if B_pad != B:
        x = jnp.pad(x, ((0, B_pad - B), (0, 0)))

    # x / out are tiled over the batch grid; all parameters are full-array
    # with constant index_maps so they stay resident in VMEM across steps.
    in_specs = [pl.BlockSpec((BB, input_size), lambda i: (i, 0))]
    args = [x]
    for name in _FOLDED_ORDER:
        a = folded[name]
        in_specs.append(pl.BlockSpec(a.shape, lambda i: (0, 0)))
        args.append(a)
    out_specs = pl.BlockSpec((BB, out_pad), lambda i: (i, 0))

    # VMEM budget: live f32/bf16 intermediates + double-buffered I/O tiles +
    # weights, clamped to [32 MiB, 48 MiB] so it fits every generation
    # (v5e default 16 MiB scoped, v7x 64 MiB physical).
    out_itemsize = jnp.dtype(out_dtype).itemsize
    per_row = (2 * hidden * 4        # fused h12 (f32)
               + 4 * hidden * 4      # x1..x4 (f32)
               + 4 * hidden * 2      # x1c..x4c (bf16)
               + out_pad * 4)        # pre-cast output (f32)
    weight_bytes = sum(int(folded[n].size) * folded[n].dtype.itemsize
                       for n in _FOLDED_ORDER)
    io_bytes = 2 * BB * (input_size * x.dtype.itemsize + out_pad * out_itemsize)
    vmem_est = BB * per_row + io_bytes + weight_bytes
    vmem_limit = int(min(max(vmem_est * 5 // 4 + (8 << 20), 32 << 20), 48 << 20))

    # Advisory cost estimate for XLA's scheduler.
    matmul_cols = (input_size * 2 * hidden       # fused dense1 + dense2a
                   + hidden * hidden             # dense2b
                   + 2 * hidden * hidden         # dense3
                   + 2 * hidden * hidden         # dense4
                   + 2 * hidden * out_pad)       # dense5
    flops = 2 * B_pad * matmul_cols
    bytes_accessed = (x.size * x.dtype.itemsize
                      + weight_bytes
                      + B_pad * out_pad * out_itemsize)

    out_padded = pl.pallas_call(
        resnet_kernel,
        out_shape=jax.ShapeDtypeStruct((B_pad, out_pad), out_dtype),
        grid=(grid_n,),
        in_specs=in_specs,
        out_specs=out_specs,
        compiler_params=pltpu.CompilerParams(
            dimension_semantics=("parallel",),
            vmem_limit_bytes=vmem_limit),
        cost_estimate=pl.CostEstimate(
            flops=flops, transcendentals=0, bytes_accessed=bytes_accessed),
    )(*args)

    return out_padded


def resnet_forward_sliced(x, folded, input_size, output_size, **kw):
    """Convenience wrapper that materializes the exact (B, output_size) view."""
    out_padded = resnet_forward(x, folded, input_size, output_size, **kw)
    return out_padded[:x.shape[0], :output_size]


# --------------------------------------------------------------------------- #
# Pure-JAX f32 reference mirroring the PyTorch eval-mode forward
# --------------------------------------------------------------------------- #
def resnet_reference(x, p, input_size, output_size, hidden=HIDDEN):
    def bn(v, prefix):
        s, t = _bn_affine(p, prefix)
        return v * s + t

    x = bn(x, "bn0")
    x1 = _leaky_relu(bn(x @ p["d1_w"] + p["d1_b"], "bn1"))
    c = jnp.concatenate([x, x1], axis=1)
    x2 = _leaky_relu(bn(c @ p["d2_w"] + p["d2_b"], "bn2"))
    c = jnp.concatenate([x1, x2], axis=1)
    x3 = _leaky_relu(bn(c @ p["d3_w"] + p["d3_b"], "bn3"))
    c = jnp.concatenate([x2, x3], axis=1)
    x4 = _leaky_relu(bn(c @ p["d4_w"] + p["d4_b"], "bn4"))
    c = jnp.concatenate([x3, x4], axis=1)
    return c @ p["d5_w"] + p["d5_b"]


if __name__ == "__main__":
    batch = 16
    input_size = 32
    output_size = 8

    key = jax.random.PRNGKey(0)
    kx, kp = jax.random.split(key)
    x = jax.random.normal(kx, (batch, input_size), jnp.float32)
    params = make_params(kp, input_size, output_size)
    folded = fold_params(params, input_size, output_size)

    out_padded = resnet_forward(x, folded, input_size, output_size)
    out_padded = jax.block_until_ready(out_padded)
    # Test-only slice; real consumers can read the padded slab directly.
    out = out_padded[:batch, :output_size].astype(jnp.float32)

    ref = resnet_reference(x, params, input_size, output_size)
    assert out.shape == (batch, output_size)
    # bf16 matmul operands + bf16 output slab -> loosened tolerance vs f32 ref.
    assert jnp.allclose(out, ref, rtol=5e-2, atol=5e-2), "mismatch vs JAX reference"

    print("KERNEL_OK")
</pallas_src>

<mosaic_0001>
module attributes {stable_mosaic.version = 11 : i64} {
  func.func @resnet_kernel(%arg0: i32, %arg1: memref<8x32xf32, #tpu.memory_space<vmem>>, %arg2: memref<1x32xf32, #tpu.memory_space<vmem>>, %arg3: memref<1x32xf32, #tpu.memory_space<vmem>>, %arg4: memref<32x512xbf16, #tpu.memory_space<vmem>>, %arg5: memref<1x256xf32, #tpu.memory_space<vmem>>, %arg6: memref<256x256xbf16, #tpu.memory_space<vmem>>, %arg7: memref<1x256xf32, #tpu.memory_space<vmem>>, %arg8: memref<256x256xbf16, #tpu.memory_space<vmem>>, %arg9: memref<256x256xbf16, #tpu.memory_space<vmem>>, %arg10: memref<1x256xf32, #tpu.memory_space<vmem>>, %arg11: memref<256x256xbf16, #tpu.memory_space<vmem>>, %arg12: memref<256x256xbf16, #tpu.memory_space<vmem>>, %arg13: memref<1x256xf32, #tpu.memory_space<vmem>>, %arg14: memref<256x128xbf16, #tpu.memory_space<vmem>>, %arg15: memref<256x128xbf16, #tpu.memory_space<vmem>>, %arg16: memref<1x128xf32, #tpu.memory_space<vmem>>, %arg17: memref<8x128xbf16, #tpu.memory_space<vmem>>) attributes {dimension_semantics = [#tpu.dimension_semantics<parallel>], iteration_bounds = array<i64: 2>, scalar_prefetch = 0 : i64, scratch_operands = 0 : i64, tpu.core_type = #tpu.core_type<tc>, window_params = [{transform_indices = @transform_0, window_bounds = array<i64: 8, 32>}, {pipeline_mode = #tpu.pipeline_mode<synchronous>, transform_indices = @transform_1, window_bounds = array<i64: 1, 32>}, {pipeline_mode = #tpu.pipeline_mode<synchronous>, transform_indices = @transform_2, window_bounds = array<i64: 1, 32>}, {pipeline_mode = #tpu.pipeline_mode<synchronous>, transform_indices = @transform_3, window_bounds = array<i64: 32, 512>}, {pipeline_mode = #tpu.pipeline_mode<synchronous>, transform_indices = @transform_4, window_bounds = array<i64: 1, 256>}, {pipeline_mode = #tpu.pipeline_mode<synchronous>, transform_indices = @transform_5, window_bounds = array<i64: 256, 256>}, {pipeline_mode = #tpu.pipeline_mode<synchronous>, transform_indices = @transform_6, window_bounds = array<i64: 1, 256>}, {pipeline_mode = #tpu.pipeline_mode<synchronous>, transform_indices = @transform_7, window_bounds = array<i64: 256, 256>}, {pipeline_mode = #tpu.pipeline_mode<synchronous>, transform_indices = @transform_8, window_bounds = array<i64: 256, 256>}, {pipeline_mode = #tpu.pipeline_mode<synchronous>, transform_indices = @transform_9, window_bounds = array<i64: 1, 256>}, {pipeline_mode = #tpu.pipeline_mode<synchronous>, transform_indices = @transform_10, window_bounds = array<i64: 256, 256>}, {pipeline_mode = #tpu.pipeline_mode<synchronous>, transform_indices = @transform_11, window_bounds = array<i64: 256, 256>}, {pipeline_mode = #tpu.pipeline_mode<synchronous>, transform_indices = @transform_12, window_bounds = array<i64: 1, 256>}, {pipeline_mode = #tpu.pipeline_mode<synchronous>, transform_indices = @transform_13, window_bounds = array<i64: 256, 128>}, {pipeline_mode = #tpu.pipeline_mode<synchronous>, transform_indices = @transform_14, window_bounds = array<i64: 256, 128>}, {pipeline_mode = #tpu.pipeline_mode<synchronous>, transform_indices = @transform_15, window_bounds = array<i64: 1, 128>}, {transform_indices = @transform_16, window_bounds = array<i64: 8, 128>}]} {
    %c0 = arith.constant 0 : index
    %c0_0 = arith.constant 0 : index
    %0 = vector.load %arg1[%c0, %c0_0] : memref<8x32xf32, #tpu.memory_space<vmem>>, vector<8x32xf32>
    %c0_1 = arith.constant 0 : index
    %c0_2 = arith.constant 0 : index
    %1 = vector.load %arg2[%c0_1, %c0_2] : memref<1x32xf32, #tpu.memory_space<vmem>>, vector<1x32xf32>
    %2 = vector.broadcast %1 : vector<1x32xf32> to vector<8x32xf32>
    %3 = arith.mulf %0, %2 : vector<8x32xf32>
    %c0_3 = arith.constant 0 : index
    %c0_4 = arith.constant 0 : index
    %4 = vector.load %arg3[%c0_3, %c0_4] : memref<1x32xf32, #tpu.memory_space<vmem>>, vector<1x32xf32>
    %5 = vector.broadcast %4 : vector<1x32xf32> to vector<8x32xf32>
    %6 = arith.addf %3, %5 : vector<8x32xf32>
    %7 = arith.truncf %6 : vector<8x32xf32> to vector<8x32xbf16>
    %c0_5 = arith.constant 0 : index
    %c0_6 = arith.constant 0 : index
    %8 = vector.load %arg4[%c0_5, %c0_6] : memref<32x512xbf16, #tpu.memory_space<vmem>>, vector<32x512xbf16>
    %cst = arith.constant dense<0.000000e+00> : vector<8x512xf32>
    %9 = tpu.matmul %7, %8, %cst {dimension_numbers = #tpu.dot_dimension_numbers<[1], [0], [0], [1], [0, 0, 1, 1], [], []>} : vector<8x32xbf16>, vector<32x512xbf16>, vector<8x512xf32> -> vector<8x512xf32>
    %10 = vector.extract_strided_slice %9 {offsets = [0, 0], sizes = [8, 256], strides = [1, 1]} : vector<8x512xf32> to vector<8x256xf32>
    %c0_7 = arith.constant 0 : index
    %c0_8 = arith.constant 0 : index
    %11 = vector.load %arg5[%c0_7, %c0_8] : memref<1x256xf32, #tpu.memory_space<vmem>>, vector<1x256xf32>
    %12 = vector.broadcast %11 : vector<1x256xf32> to vector<8x256xf32>
    %13 = arith.addf %10, %12 : vector<8x256xf32>
    %cst_9 = arith.constant 0.000000e+00 : f32
    %14 = vector.broadcast %cst_9 : f32 to vector<8x256xf32>
    %15 = arith.cmpf ogt, %13, %14 : vector<8x256xf32>
    %cst_10 = arith.constant 0.00999999977 : f32
    %16 = vector.broadcast %cst_10 : f32 to vector<8x256xf32>
    %17 = arith.mulf %16, %13 : vector<8x256xf32>
    %18 = arith.select %15, %13, %17 : vector<8x256xi1>, vector<8x256xf32>
    %19 = arith.truncf %18 : vector<8x256xf32> to vector<8x256xbf16>
    %20 = vector.extract_strided_slice %9 {offsets = [0, 256], sizes = [8, 256], strides = [1, 1]} : vector<8x512xf32> to vector<8x256xf32>
    %c0_11 = arith.constant 0 : index
    %c0_12 = arith.constant 0 : index
    %21 = vector.load %arg6[%c0_11, %c0_12] : memref<256x256xbf16, #tpu.memory_space<vmem>>, vector<256x256xbf16>
    %cst_13 = arith.constant dense<0.000000e+00> : vector<8x256xf32>
    %22 = tpu.matmul %19, %21, %cst_13 {dimension_numbers = #tpu.dot_dimension_numbers<[1], [0], [0], [1], [0, 0, 1, 1], [], []>} : vector<8x256xbf16>, vector<256x256xbf16>, vector<8x256xf32> -> vector<8x256xf32>
    %23 = arith.addf %20, %22 : vector<8x256xf32>
    %c0_14 = arith.constant 0 : index
    %c0_15 = arith.constant 0 : index
    %24 = vector.load %arg7[%c0_14, %c0_15] : memref<1x256xf32, #tpu.memory_space<vmem>>, vector<1x256xf32>
    %25 = vector.broadcast %24 : vector<1x256xf32> to vector<8x256xf32>
    %26 = arith.addf %23, %25 : vector<8x256xf32>
    %cst_16 = arith.constant 0.000000e+00 : f32
    %27 = vector.broadcast %cst_16 : f32 to vector<8x256xf32>
    %28 = arith.cmpf ogt, %26, %27 : vector<8x256xf32>
    %cst_17 = arith.constant 0.00999999977 : f32
    %29 = vector.broadcast %cst_17 : f32 to vector<8x256xf32>
    %30 = arith.mulf %29, %26 : vector<8x256xf32>
    %31 = arith.select %28, %26, %30 : vector<8x256xi1>, vector<8x256xf32>
    %32 = arith.truncf %31 : vector<8x256xf32> to vector<8x256xbf16>
    %c0_18 = arith.constant 0 : index
    %c0_19 = arith.constant 0 : index
    %33 = vector.load %arg8[%c0_18, %c0_19] : memref<256x256xbf16, #tpu.memory_space<vmem>>, vector<256x256xbf16>
    %cst_20 = arith.constant dense<0.000000e+00> : vector<8x256xf32>
    %34 = tpu.matmul %19, %33, %cst_20 {dimension_numbers = #tpu.dot_dimension_numbers<[1], [0], [0], [1], [0, 0, 1, 1], [], []>} : vector<8x256xbf16>, vector<256x256xbf16>, vector<8x256xf32> -> vector<8x256xf32>
    %c0_21 = arith.constant 0 : index
    %c0_22 = arith.constant 0 : index
    %35 = vector.load %arg9[%c0_21, %c0_22] : memref<256x256xbf16, #tpu.memory_space<vmem>>, vector<256x256xbf16>
    %cst_23 = arith.constant dense<0.000000e+00> : vector<8x256xf32>
    %36 = tpu.matmul %32, %35, %cst_23 {dimension_numbers = #tpu.dot_dimension_numbers<[1], [0], [0], [1], [0, 0, 1, 1], [], []>} : vector<8x256xbf16>, vector<256x256xbf16>, vector<8x256xf32> -> vector<8x256xf32>
    %37 = arith.addf %34, %36 : vector<8x256xf32>
    %c0_24 = arith.constant 0 : index
    %c0_25 = arith.constant 0 : index
    %38 = vector.load %arg10[%c0_24, %c0_25] : memref<1x256xf32, #tpu.memory_space<vmem>>, vector<1x256xf32>
    %39 = vector.broadcast %38 : vector<1x256xf32> to vector<8x256xf32>
    %40 = arith.addf %37, %39 : vector<8x256xf32>
    %cst_26 = arith.constant 0.000000e+00 : f32
    %41 = vector.broadcast %cst_26 : f32 to vector<8x256xf32>
    %42 = arith.cmpf ogt, %40, %41 : vector<8x256xf32>
    %cst_27 = arith.constant 0.00999999977 : f32
    %43 = vector.broadcast %cst_27 : f32 to vector<8x256xf32>
    %44 = arith.mulf %43, %40 : vector<8x256xf32>
    %45 = arith.select %42, %40, %44 : vector<8x256xi1>, vector<8x256xf32>
    %46 = arith.truncf %45 : vector<8x256xf32> to vector<8x256xbf16>
    %c0_28 = arith.constant 0 : index
    %c0_29 = arith.constant 0 : index
    %47 = vector.load %arg11[%c0_28, %c0_29] : memref<256x256xbf16, #tpu.memory_space<vmem>>, vector<256x256xbf16>
    %cst_30 = arith.constant dense<0.000000e+00> : vector<8x256xf32>
    %48 = tpu.matmul %32, %47, %cst_30 {dimension_numbers = #tpu.dot_dimension_numbers<[1], [0], [0], [1], [0, 0, 1, 1], [], []>} : vector<8x256xbf16>, vector<256x256xbf16>, vector<8x256xf32> -> vector<8x256xf32>
    %c0_31 = arith.constant 0 : index
    %c0_32 = arith.constant 0 : index
    %49 = vector.load %arg12[%c0_31, %c0_32] : memref<256x256xbf16, #tpu.memory_space<vmem>>, vector<256x256xbf16>
    %cst_33 = arith.constant dense<0.000000e+00> : vector<8x256xf32>
    %50 = tpu.matmul %46, %49, %cst_33 {dimension_numbers = #tpu.dot_dimension_numbers<[1], [0], [0], [1], [0, 0, 1, 1], [], []>} : vector<8x256xbf16>, vector<256x256xbf16>, vector<8x256xf32> -> vector<8x256xf32>
    %51 = arith.addf %48, %50 : vector<8x256xf32>
    %c0_34 = arith.constant 0 : index
    %c0_35 = arith.constant 0 : index
    %52 = vector.load %arg13[%c0_34, %c0_35] : memref<1x256xf32, #tpu.memory_space<vmem>>, vector<1x256xf32>
    %53 = vector.broadcast %52 : vector<1x256xf32> to vector<8x256xf32>
    %54 = arith.addf %51, %53 : vector<8x256xf32>
    %cst_36 = arith.constant 0.000000e+00 : f32
    %55 = vector.broadcast %cst_36 : f32 to vector<8x256xf32>
    %56 = arith.cmpf ogt, %54, %55 : vector<8x256xf32>
    %cst_37 = arith.constant 0.00999999977 : f32
    %57 = vector.broadcast %cst_37 : f32 to vector<8x256xf32>
    %58 = arith.mulf %57, %54 : vector<8x256xf32>
    %59 = arith.select %56, %54, %58 : vector<8x256xi1>, vector<8x256xf32>
    %60 = arith.truncf %59 : vector<8x256xf32> to vector<8x256xbf16>
    %c0_38 = arith.constant 0 : index
    %c0_39 = arith.constant 0 : index
    %61 = vector.load %arg14[%c0_38, %c0_39] : memref<256x128xbf16, #tpu.memory_space<vmem>>, vector<256x128xbf16>
    %cst_40 = arith.constant dense<0.000000e+00> : vector<8x128xf32>
    %62 = tpu.matmul %46, %61, %cst_40 {dimension_numbers = #tpu.dot_dimension_numbers<[1], [0], [0], [1], [0, 0, 1, 1], [], []>} : vector<8x256xbf16>, vector<256x128xbf16>, vector<8x128xf32> -> vector<8x128xf32>
    %c0_41 = arith.constant 0 : index
    %c0_42 = arith.constant 0 : index
    %63 = vector.load %arg15[%c0_41, %c0_42] : memref<256x128xbf16, #tpu.memory_space<vmem>>, vector<256x128xbf16>
    %cst_43 = arith.constant dense<0.000000e+00> : vector<8x128xf32>
    %64 = tpu.matmul %60, %63, %cst_43 {dimension_numbers = #tpu.dot_dimension_numbers<[1], [0], [0], [1], [0, 0, 1, 1], [], []>} : vector<8x256xbf16>, vector<256x128xbf16>, vector<8x128xf32> -> vector<8x128xf32>
    %65 = arith.addf %62, %64 : vector<8x128xf32>
    %c0_44 = arith.constant 0 : index
    %c0_45 = arith.constant 0 : index
    %66 = vector.load %arg16[%c0_44, %c0_45] : memref<1x128xf32, #tpu.memory_space<vmem>>, vector<1x128xf32>
    %67 = vector.broadcast %66 : vector<1x128xf32> to vector<8x128xf32>
    %68 = arith.addf %65, %67 : vector<8x128xf32>
    %69 = arith.truncf %68 : vector<8x128xf32> to vector<8x128xbf16>
    %c0_46 = arith.constant 0 : index
    %c0_47 = arith.constant 0 : index
    %70 = vector.load %arg17[%c0_46, %c0_47] : memref<8x128xbf16, #tpu.memory_space<vmem>>, vector<8x128xbf16>
    tpu.vector_store %arg17[%c0_46, %c0_47], %69 {strides = array<i32>} : memref<8x128xbf16, #tpu.memory_space<vmem>>, vector<8x128xbf16>,
    return
  }
  func.func @transform_0(%arg0: i32) -> (i32, i32) {
    %c0_i32 = arith.constant 0 : i32
    %c0_i32_0 = arith.constant 0 : i32
    return %arg0, %c0_i32 : i32, i32
  }
  func.func @transform_1(%arg0: i32) -> (i32, i32) {
    %c0_i32 = arith.constant 0 : i32
    %c0_i32_0 = arith.constant 0 : i32
    %c0_i32_1 = arith.constant 0 : i32
    return %c0_i32, %c0_i32_0 : i32, i32
  }
  func.func @transform_2(%arg0: i32) -> (i32, i32) {
    %c0_i32 = arith.constant 0 : i32
    %c0_i32_0 = arith.constant 0 : i32
    %c0_i32_1 = arith.constant 0 : i32
    return %c0_i32, %c0_i32_0 : i32, i32
  }
  func.func @transform_3(%arg0: i32) -> (i32, i32) {
    %c0_i32 = arith.constant 0 : i32
    %c0_i32_0 = arith.constant 0 : i32
    %c0_i32_1 = arith.constant 0 : i32
    return %c0_i32, %c0_i32_0 : i32, i32
  }
  func.func @transform_4(%arg0: i32) -> (i32, i32) {
    %c0_i32 = arith.constant 0 : i32
    %c0_i32_0 = arith.constant 0 : i32
    %c0_i32_1 = arith.constant 0 : i32
    return %c0_i32, %c0_i32_0 : i32, i32
  }
  func.func @transform_5(%arg0: i32) -> (i32, i32) {
    %c0_i32 = arith.constant 0 : i32
    %c0_i32_0 = arith.constant 0 : i32
    %c0_i32_1 = arith.constant 0 : i32
    return %c0_i32, %c0_i32_0 : i32, i32
  }
  func.func @transform_6(%arg0: i32) -> (i32, i32) {
    %c0_i32 = arith.constant 0 : i32
    %c0_i32_0 = arith.constant 0 : i32
    %c0_i32_1 = arith.constant 0 : i32
    return %c0_i32, %c0_i32_0 : i32, i32
  }
  func.func @transform_7(%arg0: i32) -> (i32, i32) {
    %c0_i32 = arith.constant 0 : i32
    %c0_i32_0 = arith.constant 0 : i32
    %c0_i32_1 = arith.constant 0 : i32
    return %c0_i32, %c0_i32_0 : i32, i32
  }
  func.func @transform_8(%arg0: i32) -> (i32, i32) {
    %c0_i32 = arith.constant 0 : i32
    %c0_i32_0 = arith.constant 0 : i32
    %c0_i32_1 = arith.constant 0 : i32
    return %c0_i32, %c0_i32_0 : i32, i32
  }
  func.func @transform_9(%arg0: i32) -> (i32, i32) {
    %c0_i32 = arith.constant 0 : i32
    %c0_i32_0 = arith.constant 0 : i32
    %c0_i32_1 = arith.constant 0 : i32
    return %c0_i32, %c0_i32_0 : i32, i32
  }
  func.func @transform_10(%arg0: i32) -> (i32, i32) {
    %c0_i32 = arith.constant 0 : i32
    %c0_i32_0 = arith.constant 0 : i32
    %c0_i32_1 = arith.constant 0 : i32
    return %c0_i32, %c0_i32_0 : i32, i32
  }
  func.func @transform_11(%arg0: i32) -> (i32, i32) {
    %c0_i32 = arith.constant 0 : i32
    %c0_i32_0 = arith.constant 0 : i32
    %c0_i32_1 = arith.constant 0 : i32
    return %c0_i32, %c0_i32_0 : i32, i32
  }
  func.func @transform_12(%arg0: i32) -> (i32, i32) {
    %c0_i32 = arith.constant 0 : i32
    %c0_i32_0 = arith.constant 0 : i32
    %c0_i32_1 = arith.constant 0 : i32
    return %c0_i32, %c0_i32_0 : i32, i32
  }
  func.func @transform_13(%arg0: i32) -> (i32, i32) {
    %c0_i32 = arith.constant 0 : i32
    %c0_i32_0 = arith.constant 0 : i32
    %c0_i32_1 = arith.constant 0 : i32
    return %c0_i32, %c0_i32_0 : i32, i32
  }
  func.func @transform_14(%arg0: i32) -> (i32, i32) {
    %c0_i32 = arith.constant 0 : i32
    %c0_i32_0 = arith.constant 0 : i32
    %c0_i32_1 = arith.constant 0 : i32
    return %c0_i32, %c0_i32_0 : i32, i32
  }
  func.func @transform_15(%arg0: i32) -> (i32, i32) {
    %c0_i32 = arith.constant 0 : i32
    %c0_i32_0 = arith.constant 0 : i32
    %c0_i32_1 = arith.constant 0 : i32
    return %c0_i32, %c0_i32_0 : i32, i32
  }
  func.func @transform_16(%arg0: i32) -> (i32, i32) {
    %c0_i32 = arith.constant 0 : i32
    %c0_i32_0 = arith.constant 0 : i32
    return %arg0, %c0_i32 : i32, i32
  }
}

</mosaic_0001>

<bundles_post_ra>
// kernel: tpu_custom_call.1
= control target key start
LH: loop header
LB: loop body
LE: loop exit
PB: predicated region body
PF: predicated region fallthrough
CT: control target
= control target key end

     0   :  { %s4058_s0 = inlined_call_operand.hbm [shape: f32[16,32], index: 0, kind: input, shape index: {}]   ;;  %s4059_s1 = inlined_call_operand.vmem [shape: f32[1,32], index: 1, kind: input, shape index: {}]   ;;  %s4060_s2 = inlined_call_operand.hbm [shape: f32[1,32], index: 2, kind: input, shape index: {}]   ;;  %s4061_s3 = inlined_call_operand.hbm [shape: bf16[32,512], index: 3, kind: input, shape index: {}]   ;;  %s4062_s4 = inlined_call_operand.vmem [shape: f32[1,256], index: 4, kind: input, shape index: {}]   ;;  %s4063_s5 = inlined_call_operand.hbm [shape: bf16[256,256], index: 5, kind: input, shape index: {}]   ;;  %s4064_s6 = inlined_call_operand.vmem [shape: f32[1,256], index: 6, kind: input, shape index: {}]   ;;  %s4065_s7 = inlined_call_operand.hbm [shape: bf16[256,256], index: 7, kind: input, shape index: {}]   ;;  %s4066_s8 = inlined_call_operand.hbm [shape: bf16[256,256], index: 8, kind: input, shape index: {}]   ;;  %s4067_s9 = inlined_call_operand.vmem [shape: f32[1,256], index: 9, kind: input, shape index: {}]   ;;  %s4068_s10 = inlined_call_operand.hbm [shape: bf16[256,256], index: 10, kind: input, shape index: {}]   ;;  %s4069_s11 = inlined_call_operand.hbm [shape: bf16[256,256], index: 11, kind: input, shape index: {}]   ;;  %s4070_s12 = inlined_call_operand.vmem [shape: f32[1,256], index: 12, kind: input, shape index: {}]   ;;  %s4071_s13 = inlined_call_operand.hbm [shape: bf16[256,128], index: 13, kind: input, shape index: {}]   ;;  %s4072_s14 = inlined_call_operand.hbm [shape: bf16[256,128], index: 14, kind: input, shape index: {}]   ;;  %s4073_s15 = inlined_call_operand.vmem [shape: f32[1,128], index: 15, kind: input, shape index: {}]   ;;  %s4074_s16 = inlined_call_operand.hbm [shape: bf16[16,128], index: 16, kind: output, shape index: {}]  }
   0x1   :  { %4085 = sst [smem:[#allocation28_spill]] %s4058_s0 }
   0x2   :  { %4086 = sst [smem:[#allocation29_spill]] %s4060_s2 }
   0x3   :  { %4087 = sst [smem:[#allocation30_spill]] %s4061_s3 }
   0x4   :  { %4088 = sst [smem:[#allocation31_spill]] %s4063_s5 }
   0x5   :  { %4089 = sst [smem:[#allocation32_spill]] %s4065_s7 }
   0x6   :  { %4090 = sst [smem:[#allocation33_spill]] %s4066_s8 }
   0x7   :  { %4091 = sst [smem:[#allocation34_spill]] %s4068_s10 }
   0x8   :  { %4092 = sst [smem:[#allocation35_spill]] %s4069_s11 }
   0x9   :  { %4093 = sst [smem:[#allocation36_spill]] %s4071_s13 }
   0xa   :  { %4094 = sst [smem:[#allocation37_spill]] %s4072_s14 }
   0xb   :  { %4095 = sst [smem:[#allocation38_spill]] %s4074_s16 }
   0xc   :  { %21 = vsyncpa [#allocation3], 0 }
   0xd   :  { %23 = vsyncpa [#allocation3 + $0x1], 0 }
   0xe   :  { %24 = vsyncpa [#allocation6], 0 }
   0xf   :  { %25 = vsyncpa [#allocation9], 0 }
  0x10   :  { %26 = vsyncpa [#allocation12], 0 }
  0x11   :  { %27 = vsyncpa [#allocation15], 0 }
  0x12   :  { %28 = vsyncpa [#allocation18], 0 }
  0x13   :  { %29 = vsyncpa [#allocation4], 0 }
  0x14   :  { %31 = vsyncpa [#allocation4 + $0x1], 0  ;;  %s3748_s21 = smov 0   ;;  %s3750_s22 = smov 0  }
  0x15   :  { %s3752_s23 = smov 0   ;;  %s3754_s24 = smov 0  }
  0x16 LB: > { %s3645_s25 = smov [#allocation5]   ;;  %s3769_s27 = sadd.s32 4294967295, %s3643_s24   ;;  %s3643_s24 = sphi %s3754_s24, %s4136_s24   ;;  %s3639_s23 = sphi %s3752_s23, %s4135_s23   ;;  %s3635_s22 = sphi %s3750_s22, %s4134_s22   ;;  %s3631_s21 = sphi %s3748_s21, %s4133_s21  }
  0x17   : > { %s425_s26 = sshll.u32 %s3645_s25, 4  ;;  %p2591_p0 = scmp.ge.s32.totalorder %s3643_s24, 1  ;;  %s426_s26 = int_to_ptr.vmem [resolvable:$true] %s425_s26 }
  0x18   : > { %p4081_p1 = scmp.eq.s32.totalorder %s3769_s27, 0  ;;  %p409_p2 = scmp.lt.s32.totalorder %s3643_s24, 3 }
  0x19   : > { %s3646_s29 = smov [#allocation8]   ;;  %s3647_s17 = smov [#allocation11]  }
  0x1a   : > { %p3774_p3 = pnand %p2591_p0, %p409_p2  ;;  %s451_s30 = sshll.u32 %s3646_s29, 4  ;;  %s3781_s30 = int_to_ptr.vmem [resolvable:$true] %s451_s30 }
  0x1b   : > { %s480_s18 = sshll.u32 %s3647_s17, 4  ;;  %s3308_s20 = scalar_lea.vmem %s426_s26, 16  ;;  %s3789_s18 = int_to_ptr.vmem [resolvable:$true] %s480_s18 }
  0x1c   : > { %s4096_s28 = scalar_select %p3774_p3, 1, 0 }
  0x1d   : > { %p2909_p5 = pneg %p3774_p3  ;;  %p3309_p8 = scmp.ne.s32.totalorder %s426_s26, %s3308_s20 }
  0x1e   : > { %s3315_s25 = scalar_lea.vmem %s426_s26, 32  ;;  %p3316_p11 = scmp.lt.s32.totalorder %s426_s26, %s426_s26 }
  0x1f   : > { %p3785_p6 = pnand %p2909_p5, %p4081_p1  ;;  %p3317_p12 = scmp.lt.s32.totalorder %s3315_s25, %s3308_s20 }
  0x21   : > { %p3793_p7 = pneg %p3785_p6  ;;  %p3318_p13 = por %p3317_p12, %p3316_p11 }
  0x23   : > { %p3311_p9 = pnand %p3309_p8, %p3793_p7 }
  0x25   : > { %p3312_p10 = pneg %p3311_p9 }
  0x27   : > { %p3319_p0 = pnand %p3318_p13, %p3312_p10 }
  0x29   : > { %3322 = shalt.err (!%p3319_p0)
}
  0x2a   : > { %s4099_s2 = sld [smem:[#allocation29_spill]]  ;;  %s3334_s16 = scalar_lea.vmem %s3781_s30, 4096 }
  0x2b   : > { %p3335_p2 = scmp.ne.s32.totalorder %s3781_s30, %s3334_s16  ;;  %p3342_p9 = scmp.lt.s32.totalorder %s3781_s30, %s3781_s30 }
  0x2c   : > { %p3343_p11 = scmp.lt.s32.totalorder %s3334_s16, %s3334_s16 }
  0x2d   : > { %p3337_p5 = pnand %p3335_p2, %p3793_p7 }
  0x2e   : > { %p3344_p10 = por %p3343_p11, %p3342_p9 }
  0x2f   : > { %p3338_p8 = pneg %p3337_p5 }
  0x30   : > { %2912 = dma.hbm_to_vmem [thread:$0]  (!%p3785_p6), %s4099_s2, 16, %s426_s26, [#allocation6]  }
  0x31   : > { %p3345_p12 = pnand %p3344_p10, %p3338_p8 }
  0x33   : > { %3348 = shalt.err (!%p3345_p12)
}
  0x34   : > { %s4077_s20 = smov 128   ;;  %s4079_s25 = smov 8  }
  0x35   : > { %s4100_s5 = sld [smem:[#allocation31_spill]]  ;;  %s3360_s16 = scalar_lea.vmem %s3789_s18, 4096 }
  0x36   : > { %p3361_p13 = scmp.ne.s32.totalorder %s3789_s18, %s3360_s16  ;;  %p3368_p5 = scmp.lt.s32.totalorder %s3789_s18, %s3789_s18 }
  0x37   : > { %p3369_p8 = scmp.lt.s32.totalorder %s3360_s16, %s3360_s16 }
  0x38   : > { %p3363_p0 = pnand %p3361_p13, %p3793_p7 }
  0x39   : > { %p3370_p9 = por %p3369_p8, %p3368_p5 }
  0x3a   : > { %p3364_p2 = pneg %p3363_p0 }
  0x3b   : > { %2918 = dma.hbm_to_vmem [thread:$0]  (!%p3785_p6), %s4100_s5, 4096, %s3781_s30, [#allocation9], %s4077_s20, %s4077_s20, %s4079_s25  }
  0x3c   : > { %p3371_p11 = pnand %p3370_p9, %p3364_p2 }
  0x3e   : > { %3374 = shalt.err (!%p3371_p11)
}
  0x3f   : > { %s4101_s8 = sld [smem:[#allocation33_spill]]  ;;  %s3650_s30 = smov [#allocation14]  }
  0x40   : > { %s509_s29 = sshll.u32 %s3650_s30, 4  ;;  %s3651_s2 = smov [#allocation7]   ;;  %s510_s29 = int_to_ptr.vmem [resolvable:$true] %s509_s29 }
  0x41   : > { %s435_s5 = sshll.u32 %s3651_s2, 4  ;;  %s3386_s16 = scalar_lea.vmem %s510_s29, 4096  ;;  %s436_s5 = int_to_ptr.vmem [resolvable:$true] %s435_s5 }
  0x42   : > { %p3387_p10 = scmp.ne.s32.totalorder %s510_s29, %s3386_s16  ;;  %p3394_p0 = scmp.lt.s32.totalorder %s510_s29, %s510_s29 }
  0x43   : > { %p3395_p2 = scmp.lt.s32.totalorder %s3386_s16, %s3386_s16 }
  0x44   : > { %p3389_p12 = pnand %p3387_p10, %p3793_p7 }
  0x45   : > { %2924 = dma.hbm_to_vmem [thread:$0]  (!%p3785_p6), %s4101_s8, 4096, %s3789_s18, [#allocation12], %s4077_s20, %s4077_s20, %s4079_s25  }
  0x46   : > { %p3390_p13 = pneg %p3389_p12  ;;  %p3396_p5 = por %p3395_p2, %p3394_p0 }
  0x48   : > { %p3397_p8 = pnand %p3396_p5, %p3390_p13 }
  0x4a   : > { %3400 = shalt.err (!%p3397_p8)
}
  0x4b   : > { %s4102_s11 = sld [smem:[#allocation35_spill]]  ;;  %s3412_s2 = scalar_lea.vmem %s436_s5, 1024 }
  0x4c   : > { %p3413_p9 = scmp.ne.s32.totalorder %s436_s5, %s3412_s2  ;;  %p3420_p12 = scmp.lt.s32.totalorder %s436_s5, %s436_s5 }
  0x4d   : > { %p3421_p0 = scmp.lt.s32.totalorder %s3412_s2, %s3412_s2 }
  0x4e   : > { %p3415_p11 = pnand %p3413_p9, %p3793_p7 }
  0x4f   : > { %p3422_p13 = por %p3421_p0, %p3420_p12 }
  0x50   : > { %p3416_p10 = pneg %p3415_p11 }
  0x51   : > { %2930 = dma.hbm_to_vmem [thread:$0]  (!%p3785_p6), %s4102_s11, 4096, %s510_s29, [#allocation15], %s4077_s20, %s4077_s20, %s4079_s25  }
  0x52   : > { %p3423_p2 = pnand %p3422_p13, %p3416_p10 }
  0x54   : > { %3426 = shalt.err (!%p3423_p2)
}
  0x55   : > { %s3652_s26 = smov 256   ;;  %s3653_s30 = smov 16  }
  0x56   : > { %s4103_s3 = sld [smem:[#allocation30_spill]]  ;;  %s3654_s29 = smov [#allocation10]  }
  0x57   : > { %s467_s17 = sshll.u32 %s3654_s29, 4  ;;  %s3655_s20 = smov [#allocation13]   ;;  %s468_s17 = int_to_ptr.vmem [resolvable:$true] %s467_s17 }
  0x58   : > { %s496_s25 = sshll.u32 %s3655_s20, 4  ;;  %s3438_s8 = scalar_lea.vmem %s468_s17, 4096  ;;  %s497_s25 = int_to_ptr.vmem [resolvable:$true] %s496_s25 }
  0x59   : > { %p3439_p5 = scmp.ne.s32.totalorder %s468_s17, %s3438_s8  ;;  %p3446_p11 = scmp.lt.s32.totalorder %s468_s17, %s468_s17 }
  0x5a   : > { %p3447_p10 = scmp.lt.s32.totalorder %s3438_s8, %s3438_s8 }
  0x5b   : > { %p3441_p8 = pnand %p3439_p5, %p3793_p7 }
  0x5c   : > { %2915 = dma.hbm_to_vmem [thread:$0]  (!%p3785_p6), %s4103_s3, 1024, %s436_s5, [#allocation6], %s3652_s26, %s3652_s26, %s3653_s30  }
  0x5d   : > { %p3442_p9 = pneg %p3441_p8  ;;  %p3448_p12 = por %p3447_p10, %p3446_p11 }
  0x5f   : > { %p3449_p0 = pnand %p3448_p12, %p3442_p9 }
  0x61   : > { %3452 = shalt.err (!%p3449_p0)
}
  0x62   : > { %s4104_s2 = smov 8   ;;  %s4105_s16 = smov 128  }
  0x63   : > { %s4106_s7 = sld [smem:[#allocation32_spill]]  ;;  %s3464_s20 = scalar_lea.vmem %s497_s25, 4096 }
  0x64   : > { %p3465_p13 = scmp.ne.s32.totalorder %s497_s25, %s3464_s20  ;;  %p3472_p8 = scmp.lt.s32.totalorder %s497_s25, %s497_s25 }
  0x65   : > { %p3473_p11 = scmp.lt.s32.totalorder %s3464_s20, %s3464_s20 }
  0x66   : > { %p3467_p2 = pnand %p3465_p13, %p3793_p7 }
  0x67   : > { %p3474_p9 = por %p3473_p11, %p3472_p8 }
  0x68   : > { %p3468_p5 = pneg %p3467_p2 }
  0x69   : > { %2921 = dma.hbm_to_vmem [thread:$0]  (!%p3785_p6), %s4106_s7, 4096, %s468_s17, [#allocation9], %s4105_s16, %s4105_s16, %s4104_s2  }
  0x6a   : > { %p3475_p10 = pnand %p3474_p9, %p3468_p5 }
  0x6c   : > { %3478 = shalt.err (!%p3475_p10)
}
  0x6d   : > { %s4107_s10 = sld [smem:[#allocation34_spill]]  ;;  %s3656_s18 = smov [#allocation16]  }
  0x6e   : > { %s525_s29 = sshll.u32 %s3656_s18, 4  ;;  %s526_s29 = int_to_ptr.vmem [resolvable:$true] %s525_s29 }
  0x6f   : > { %s3490_s17 = scalar_lea.vmem %s526_s29, 2048  ;;  %p3498_p2 = scmp.lt.s32.totalorder %s526_s29, %s526_s29 }
  0x70   : > { %p3491_p12 = scmp.ne.s32.totalorder %s526_s29, %s3490_s17  ;;  %p3499_p5 = scmp.lt.s32.totalorder %s3490_s17, %s3490_s17 }
  0x72   : > { %p3493_p0 = pnand %p3491_p12, %p3793_p7  ;;  %p3500_p8 = por %p3499_p5, %p3498_p2 }
  0x73   : > { %2927 = dma.hbm_to_vmem [thread:$0]  (!%p3785_p6), %s4107_s10, 4096, %s497_s25, [#allocation12], %s4105_s16, %s4105_s16, %s4104_s2  }
  0x74   : > { %p3494_p13 = pneg %p3493_p0 }
  0x76   : > { %p3501_p11 = pnand %p3500_p8, %p3494_p13 }
  0x78   : > { %3504 = shalt.err (!%p3501_p11)
}
  0x79   : > { %s3657_s5 = smov 64   ;;  %s3658_s26 = smov 4  }
  0x7a   : > { %s4108_s13 = sld [smem:[#allocation36_spill]]  ;;  %s3659_s2 = smov [#allocation17]  }
  0x7b   : > { %s538_s16 = sshll.u32 %s3659_s2, 4  ;;  %s539_s16 = int_to_ptr.vmem [resolvable:$true] %s538_s16 }
  0x7c   : > { %s3516_s8 = scalar_lea.vmem %s539_s16, 2048  ;;  %p3524_p0 = scmp.lt.s32.totalorder %s539_s16, %s539_s16 }
  0x7d   : > { %p3517_p9 = scmp.ne.s32.totalorder %s539_s16, %s3516_s8  ;;  %p3525_p13 = scmp.lt.s32.totalorder %s3516_s8, %s3516_s8 }
  0x7f   : > { %p3519_p10 = pnand %p3517_p9, %p3793_p7  ;;  %p3526_p2 = por %p3525_p13, %p3524_p0 }
  0x80   : > { %2933 = dma.hbm_to_vmem [thread:$0]  (!%p3785_p6), %s4108_s13, 2048, %s526_s29, [#allocation15], %s3657_s5, %s3657_s5, %s3658_s26  }
  0x81   : > { %p3520_p12 = pneg %p3519_p10 }
  0x83   : > { %p3527_p5 = pnand %p3526_p2, %p3520_p12 }
  0x85   : > { %3530 = shalt.err (!%p3527_p5)
}
  0x86   : > { %s4109_s14 = sld [smem:[#allocation37_spill]]  ;;  %s2590_s19 = sadd.s32 4294967294, %s3643_s24  }
  0x87   : > { %s3887_s0 = sadd.s32 1, %s3643_s24   ;;  %s44_s29 = sadd.s32 1, %s3639_s23 }
  0x88   : > { %s41_s17 = ssub.s32 %s3643_s24, %s3887_s0  ;;  %p51_p7 = scmp.ne.s32.totalorder %s3639_s23, %s3635_s22 }
  0x89   : > { %p42_p8 = scmp.eq.s32.totalorder %s41_s17, 0  ;;  %p52_p11 = scmp.eq.s32.totalorder %s3643_s24, 0 }
  0x8a   : > { %p57_p9 = scmp.ne.s32.totalorder %s3635_s22, %s3631_s21  ;;  %p396_p10 = scmp.eq.s32.totalorder %s3769_s27, 1 }
  0x8b   : > { %s3899_s20 = scalar_select %p42_p8, %s3639_s23, %s44_s29  }
  0x8c   : > { %2936 = dma.hbm_to_vmem [thread:$0]  (!%p3785_p6), %s4109_s14, 2048, %s539_s16, [#allocation18], %s3657_s5, %s3657_s5, %s3658_s26  }
  0x8d   : > { %4110 = sst [smem:[#allocation27_spill]] %s3899_s20  ;;  %p53_p12 = por %p52_p11, %p51_p7 }
  0x8e   : > { %p3903_p0 = por %p4081_p1, %p57_p9  ;;  %p3907_p6 = por %p396_p10, %p51_p7 }
  0x8f   : > { %p402_p13 = scmp.eq.s32.totalorder %s2590_s19, 1  ;;  %p2954_p2 = scmp.lt.s32.totalorder %s3643_s24, 2 }
  0x90   : > { %s4111_s25 = scalar_select %p3903_p0, 1, 0 }
  0x91   : > { %s4112_s5 = scalar_select %p3907_p6, 1, 0 }
  0x92   : > { %s555_s26 = sand.u32 1, %s3639_s23   ;;  %p3913_p5 = por %p402_p13, %p57_p9 }
  0x93   : > { %s2602_s16 = sshll.u32 %s555_s26, 3  ;;  %s2603_s8 = sshll.u32 %s3643_s24, 7 }
  0x94   : > { %s4113_s2 = scalar_select %p3913_p5, 1, 0 }
  0x95   : > { %s4114_s29 = sld [smem:[#allocation28_spill]]  ;;  %s559_s3 = scalar_lea.vmem [#allocation2], %s2602_s16 }
  0x96   : > { %s566_s7 = sshll.u32 %s559_s3, 4  ;;  %p3923_p7 = pnand %p2954_p2, %p53_p12  ;;  %s567_s7 = int_to_ptr.vmem [resolvable:$true] %s566_s7 }
  0x97   : > { %s556_s10 = scalar_lea.sflag [#allocation3], %s555_s26 }
  0x98   : > { %p3533_p11 = pneg %p3923_p7 }
  0x9b   : > { %s3921_s17 = scalar_lea.hbm %s4114_s29, %s2603_s8  ;;  %s3536_s18 = scalar_lea.hbm %s4114_s29, 256 }
  0x9c   : > { %s3531_s11 = scalar_lea.hbm %s3921_s17, 128  ;;  %p3537_p12 = scmp.lt.s32.totalorder %s3921_s17, %s4114_s29 }
  0x9d   : > { %p3532_p8 = scmp.ne.s32.totalorder %s3921_s17, %s3531_s11  ;;  %p3538_p13 = scmp.lt.s32.totalorder %s3536_s18, %s3531_s11 }
  0x9f   : > { %p3534_p9 = pnand %p3533_p11, %p3532_p8  ;;  %p3539_p2 = por %p3538_p13, %p3537_p12 }
  0xa1   : > { %p3535_p10 = pneg %p3534_p9 }
  0xa3   : > { %p3540_p4 = pnand %p3539_p2, %p3535_p10 }
  0xa5   : > { %3543 = shalt.err (!%p3540_p4)
}
  0xa6   : > { %s3544_s3 = scalar_lea.vmem %s567_s7, 128  ;;  %s3660_s26 = smov [#allocation2]  }
  0xa7   : > { %p3545_p1 = scmp.ne.s32.totalorder %s567_s7, %s3544_s3  ;;  %s3549_s14 = sshll.u32 %s3660_s26, 4  ;;  %s3550_s14 = int_to_ptr.vmem [resolvable:$false] %s3549_s14 }
  0xa8   : > { %s3551_s20 = scalar_lea.vmem %s3550_s14, 256  ;;  %p3552_p8 = scmp.lt.s32.totalorder %s567_s7, %s3550_s14 }
  0xa9   : > { %p3547_p5 = pnand %p3545_p1, %p3533_p11  ;;  %p3553_p9 = scmp.lt.s32.totalorder %s3551_s20, %s3544_s3 }
  0xab   : > { %p3548_p6 = pneg %p3547_p5  ;;  %p3554_p0 = por %p3553_p9, %p3552_p8 }
  0xad   : > { %p3555_p3 = pnand %p3554_p0, %p3548_p6 }
  0xaf   : > { %3558 = shalt.err (!%p3555_p3)
}
  0xb0   : > { %2940 = dma.hbm_to_vmem [thread:$0]  (!%p3923_p7), %s3921_s17, 128, %s567_s7, %s556_s10  }
  0xb1   : > { %p4116_p10 = scmp.ne.s32.totalorder %s4096_s28, 0 }
  0xb2   : > { %s3944_s11 = sand.u32 (!%p4116_p10), 1, %s3635_s22   ;;  %p4117_p1 = scmp.ne.s32.totalorder (!%p4116_p10), %s4111_s25, 0 }
  0xb3   : > { %575 = sbr.rel (%p4116_p10) target bundleno = 1276 (0x4fc), region = 84  ;;  %s2605_s13 = sshll.u32 (!%p4116_p10), %s3944_s11, 3 }
  0xb4   : > { %s578_s8 = scalar_lea.sflag (!%p4116_p10), [#allocation3], %s3944_s11  ;;  %s581_s14 = scalar_lea.vmem (!%p4116_p10), [#allocation2], %s2605_s13 }
  0xb8   : > { %3602 = dma.done.wait (%p4117_p1), %s578_s8, 128  }
  0xb9   : > { %3604 = vsyncadd (%p4117_p1), %s578_s8, 4294967168  ;;  %p4118_p3 = scmp.eq.s32.totalorder %s3769_s27, 0 }
  0xbb   : > { %3606 = dma.done.wait (%p4118_p3), [#allocation6], 1040   ;;  %p4119_p4 = pmov %p4118_p3 }
  0xbc   : > { %p4120_p0 = pmov %p4118_p3 }
  0xbd   : > { %3608 = vsyncadd (%p4119_p4), [#allocation6], 4294966256 }
  0xbe   : > { %3610 = dma.done.wait (%p4120_p0), [#allocation9], 8192   ;;  %p4121_p6 = pmov %p4120_p0 }
  0xbf   : > { %p4122_p5 = pmov %p4120_p0 }
  0xc0   : > { %3612 = vsyncadd (%p4121_p6), [#allocation9], 4294959104 }
  0xc1   : > { %3614 = dma.done.wait (%p4122_p5), [#allocation12], 8192   ;;  %p4123_p7 = pmov %p4120_p0 }
  0xc2   : > { %p4124_p11 = pmov %p4120_p0 }
  0xc3   : > { %3616 = vsyncadd (%p4123_p7), [#allocation12], 4294959104 }
  0xc4   : > { %3618 = dma.done.wait (%p4124_p11), [#allocation15], 6144   ;;  %p4125_p12 = pmov %p4120_p0 }
  0xc5   : > { %p4126_p13 = pmov %p4120_p0 }
  0xc6   : > { %3620 = vsyncadd (%p4125_p12), [#allocation15], 4294961152 }
  0xc7   : > { %3622 = dma.done.wait (%p4126_p13), [#allocation18], 2048   ;;  %p4127_p2 = pmov %p4120_p0 }
  0xc8   : > { %v3661_v0 = vmov 0   ;;  %v3013_v1 = vld [vmem:[#allocation7 + $0x24] ss:$16 sps:$4 sm:$0xff]   ;;  %v3015_v2 = vld [vmem:[#allocation7 + $0x20] ss:$16 sps:$4 sm:$0xff]   ;;  %vm733_vm0 = vcmask 261120  }
  0xc9   : > { %3624 = vsyncadd (%p4127_p2), [#allocation18], 4294965248  ;;  %769 = vmatprep.mubr.bf16.mxu0 %v3661_v0  ;;  %810 = vmatprep.mubr.bf16.mxu1 %v3661_v0  ;;  %v3016_v3 = vld [vmem:[#allocation7 + $0x4] ss:$16 sps:$4 sm:$0xff]   ;;  %v3018_v4 = vld [vmem:[#allocation7] ss:$16 sps:$4 sm:$0xff]  }
  0xca   : > { %749 = vmatprep.subr.bf16.mxu0 %v3013_v1  ;;  %v667_v5 = vld [vmem:[%s581_s14] sm:$0xff]  ;;  %v2617_v7 = vld [vmem:[#allocation5] ss:$0 sm:$0xff]  ;;  %v3022_v14 = vld [vmem:[#allocation8 + $0x60] ss:$8 sps:$4 sm:$0xff]   ;;  %s2615_s3 = sshll.u32 %s3944_s11, 2 }
  0xcb   : > { %750 = vmatpush1.bf16.msra.mxu0 %v3015_v2  ;;  %v2616_v6 = vld [vmem:[%s4059_s1] ss:$0 sm:$0xff]  ;;  %v3021_v9 = vld [vmem:[#allocation8 + $0x74] ss:$8 sps:$4 sm:$0xff]   ;;  %v3019_v11 = vld [vmem:[#allocation8 + $0x70] ss:$8 sps:$4 sm:$0xff]  }
  0xcc   : > { %751 = vmatprep.subr.bf16.mxu0 %v3016_v3  ;;  %v675_v8 = vmul.f32 %v2616_v6, %v667_v5  ;;  %v3024_v13 = vld [vmem:[#allocation8 + $0x64] ss:$8 sps:$4 sm:$0xff]   ;;  %v3027_v15 = vld [vmem:[#allocation8 + $0x54] ss:$8 sps:$4 sm:$0xff]   ;;  %v3025_v16 = vld [vmem:[#allocation8 + $0x50] ss:$8 sps:$4 sm:$0xff]   ;;  %v821_v5 = vlaneseq }
  0xcd   : > { %v3030_v17 = vld [vmem:[#allocation8 + $0x44] ss:$8 sps:$4 sm:$0xff]   ;;  %v3028_v18 = vld [vmem:[#allocation8 + $0x40] ss:$8 sps:$4 sm:$0xff]   ;;  %v3033_v19 = vld [vmem:[#allocation8 + $0x34] ss:$8 sps:$4 sm:$0xff]  }
  0xce   : > { %v683_v10 = vadd.f32 %v2617_v7, %v675_v8  ;;  %v3058_v20 = vld [vmem:[#allocation7 + $0x2c] ss:$16 sps:$4 sm:$0xff]   ;;  %v3060_v21 = vld [vmem:[#allocation7 + $0x28] ss:$16 sps:$4 sm:$0xff]   ;;  %v822_v8 = vshrl.u32 %v821_v5, 7  ;;  %s2822_s8 = sshll.u32 %s3769_s27, 6 }
  0xcf   : > { %752 = vmatpush1.bf16.msra.mxu0 %v3018_v4  ;;  %v3031_v22 = vld [vmem:[#allocation8 + $0x30] ss:$8 sps:$4 sm:$0xff]   ;;  %v3036_v23 = vld [vmem:[#allocation8 + $0x24] ss:$8 sps:$4 sm:$0xff]   ;;  %790 = vmatprep.subr.bf16.mxu1 %v3058_v20  ;;  %v3034_v24 = vld [vmem:[#allocation8 + $0x20] ss:$8 sps:$4 sm:$0xff]  }
  0xd0   : > { %v3975_v12 = vpack.c.bf16 %v683_v10, %v683_v10  ;;  %1033 = vmatprep.subr.bf16.mxu0 %v3021_v9  ;;  %791 = vmatpush1.bf16.msra.mxu1 %v3060_v21  ;;  %v3039_v25 = vld [vmem:[#allocation8 + $0x14] ss:$8 sps:$4 sm:$0xff]   ;;  %v3037_v26 = vld [vmem:[#allocation8 + $0x10] ss:$8 sps:$4 sm:$0xff]   ;;  %v3042_v27 = vld [vmem:[#allocation8 + $0x4] ss:$8 sps:$4 sm:$0xff]  }
  0xd1   : > { %v3040_v28 = vld [vmem:[#allocation8] ss:$8 sps:$4 sm:$0xff]   ;;  %v3045_v29 = vld [vmem:[#allocation8 + $0xf4] ss:$8 sps:$4 sm:$0xff]   ;;  %v3043_v30 = vld [vmem:[#allocation8 + $0xf0] ss:$8 sps:$4 sm:$0xff]  }
  0xd2   : > { %2626 = vmatmul.mubr.msk.bf16.vlgmr.msra.gmra.mxu0 %vm733_vm0, %v3975_v12  ;;  %v3048_v31 = vld [vmem:[#allocation8 + $0xe4] ss:$8 sps:$4 sm:$0xff]   ;;  %v3046_v32 = vld [vmem:[#allocation8 + $0xe0] ss:$8 sps:$4 sm:$0xff]   ;;  %v3051_v33 = vld [vmem:[#allocation8 + $0xd4] ss:$8 sps:$4 sm:$0xff]  }
  0xd3   : > { %1034 = vmatpush1.bf16.msra.mxu0 %v3019_v11  ;;  %v3049_v34 = vld [vmem:[#allocation8 + $0xd0] ss:$8 sps:$4 sm:$0xff]   ;;  %v3054_v35 = vld [vmem:[#allocation8 + $0xc4] ss:$8 sps:$4 sm:$0xff]   ;;  %v3052_v36 = vld [vmem:[#allocation8 + $0xc0] ss:$8 sps:$4 sm:$0xff]  }
  0xd4   : > { %1035 = vmatprep.subr.bf16.mxu0 %v3024_v13  ;;  %v3057_v37 = vld [vmem:[#allocation8 + $0xb4] ss:$8 sps:$4 sm:$0xff]   ;;  %v3055_v38 = vld [vmem:[#allocation8 + $0xb0] ss:$8 sps:$4 sm:$0xff]   ;;  %v3063_v39 = vld [vmem:[#allocation8 + $0xa4] ss:$8 sps:$4 sm:$0xff]  }
  0xd5   : > { %v3061_v40 = vld [vmem:[#allocation8 + $0xa0] ss:$8 sps:$4 sm:$0xff]   ;;  %v3064_v41 = vld [vmem:[#allocation7 + $0xc] ss:$16 sps:$4 sm:$0xff]   ;;  %v3067_v44 = vld [vmem:[#allocation8 + $0x90] ss:$8 sps:$4 sm:$0xff]  }
  0xd6   : > { %v3066_v42 = vld [vmem:[#allocation7 + $0x8] ss:$16 sps:$4 sm:$0xff]   ;;  %v3069_v43 = vld [vmem:[#allocation8 + $0x94] ss:$8 sps:$4 sm:$0xff]   ;;  %792 = vmatprep.subr.bf16.mxu1 %v3064_v41  ;;  %v3072_v45 = vld [vmem:[#allocation8 + $0x84] ss:$8 sps:$4 sm:$0xff]  }
  0xd7   : > { %1036 = vmatpush1.bf16.msra.mxu0 %v3022_v14  ;;  %793 = vmatpush1.bf16.msra.mxu1 %v3066_v42  ;;  %v3070_v46 = vld [vmem:[#allocation8 + $0x80] ss:$8 sps:$4 sm:$0xff]   ;;  %v3075_v47 = vld [vmem:[#allocation10 + $0x74] ss:$8 sps:$4 sm:$0xff]   ;;  %v3121_v48 = vld [vmem:[#allocation11 + $0x70] ss:$8 sps:$4 sm:$0xff]  }
  0xd8   : > { %1037 = vmatprep.subr.bf16.mxu0 %v3027_v15  ;;  %v3123_v49 = vld [vmem:[#allocation11 + $0x74] ss:$8 sps:$4 sm:$0xff]   ;;  %v3129_v50 = vld [vmem:[#allocation11 + $0x64] ss:$8 sps:$4 sm:$0xff]   ;;  %v3127_v51 = vld [vmem:[#allocation11 + $0x60] ss:$8 sps:$4 sm:$0xff]  }
  0xd9   : > { %1322 = vmatprep.subr.bf16.mxu1 %v3123_v49  ;;  %v3135_v52 = vld [vmem:[#allocation11 + $0x54] ss:$8 sps:$4 sm:$0xff]   ;;  %v3133_v53 = vld [vmem:[#allocation11 + $0x50] ss:$8 sps:$4 sm:$0xff]   ;;  %v3141_v54 = vld [vmem:[#allocation11 + $0x44] ss:$8 sps:$4 sm:$0xff]  }
  0xda   : > { %2627 = vmatmul.mubr.msk.bf16.vlgmr.msra.gmra.mxu1 %vm733_vm0, %v3975_v12  ;;  %v3139_v55 = vld [vmem:[#allocation11 + $0x40] ss:$8 sps:$4 sm:$0xff]   ;;  %v3147_v56 = vld [vmem:[#allocation11 + $0x34] ss:$8 sps:$4 sm:$0xff]   ;;  %v3145_v57 = vld [vmem:[#allocation11 + $0x30] ss:$8 sps:$4 sm:$0xff]  }
  0xdb   : > { %1038 = vmatpush1.bf16.msra.mxu0 %v3025_v16  ;;  %1323 = vmatpush1.bf16.msra.mxu1 %v3121_v48  ;;  %v3153_v58 = vld [vmem:[#allocation11 + $0x24] ss:$8 sps:$4 sm:$0xff]   ;;  %v3151_v59 = vld [vmem:[#allocation11 + $0x20] ss:$8 sps:$4 sm:$0xff]   ;;  %v3159_v60 = vld [vmem:[#allocation11 + $0x14] ss:$8 sps:$4 sm:$0xff]  }
  0xdc   : > { %1039 = vmatprep.subr.bf16.mxu0 %v3030_v17  ;;  %1324 = vmatprep.subr.bf16.mxu1 %v3129_v50  ;;  %v3157_v61 = vld [vmem:[#allocation11 + $0x10] ss:$8 sps:$4 sm:$0xff]   ;;  %v3165_v62 = vld [vmem:[#allocation11 + $0x4] ss:$8 sps:$4 sm:$0xff]   ;;  %v3163_v63 = vld [vmem:[#allocation11] ss:$8 sps:$4 sm:$0xff]  }
  0xdd   : > { %v3171_v0 = vld [vmem:[#allocation11 + $0xf4] ss:$8 sps:$4 sm:$0xff]   ;;  %v3169_v1 = vld [vmem:[#allocation11 + $0xf0] ss:$8 sps:$4 sm:$0xff]   ;;  %v3177_v2 = vld [vmem:[#allocation11 + $0xe4] ss:$8 sps:$4 sm:$0xff]  }
  0xde   : > { %v3175_v3 = vld [vmem:[#allocation11 + $0xe0] ss:$8 sps:$4 sm:$0xff]   ;;  %v3183_v4 = vld [vmem:[#allocation11 + $0xd4] ss:$8 sps:$4 sm:$0xff]   ;;  %v3181_v6 = vld [vmem:[#allocation11 + $0xd0] ss:$8 sps:$4 sm:$0xff]  }
  0xdf   : > { %1040 = vmatpush1.bf16.msra.mxu0 %v3028_v18  ;;  %1325 = vmatpush1.bf16.msra.mxu1 %v3127_v51  ;;  %v3189_v7 = vld [vmem:[#allocation11 + $0xc4] ss:$8 sps:$4 sm:$0xff]   ;;  %v3187_v9 = vld [vmem:[#allocation11 + $0xc0] ss:$8 sps:$4 sm:$0xff]   ;;  %v3195_v10 = vld [vmem:[#allocation11 + $0xb4] ss:$8 sps:$4 sm:$0xff]  }
  0xe0   : > { %1041 = vmatprep.subr.bf16.mxu0 %v3033_v19  ;;  %1326 = vmatprep.subr.bf16.mxu1 %v3135_v52  ;;  %v3981_v11 = vsub.s32 0, %v822_v8  ;;  %v819_v12 = vld [vmem:[%s4062_s4] sm:$0x3]  ;;  %v3193_v13 = vld [vmem:[#allocation11 + $0xb0] ss:$8 sps:$4 sm:$0xff]   ;;  %v3986_v14 = vsub.s32 1, %v822_v8 }
  0xe1   : > { %v3091_v41 = vld [vmem:[#allocation10 + $0x10] ss:$8 sps:$4 sm:$0xff]   ;;  %v3096_v42 = vld [vmem:[#allocation10 + $0x4] ss:$8 sps:$4 sm:$0xff]   ;;  %v3105_v48 = vld [vmem:[#allocation10 + $0xd4] ss:$8 sps:$4 sm:$0xff]  }
  0xe2   : > { %v824_v15 = vrot.slane %v819_v12, %v3981_v11  ;;  %v828_v16 = vrot.slane %v819_v12, %v3986_v14  ;;  %v3103_v49 = vld [vmem:[#allocation10 + $0xd0] ss:$8 sps:$4 sm:$0xff]   ;;  %v3108_v50 = vld [vmem:[#allocation10 + $0xc4] ss:$8 sps:$4 sm:$0xff]   ;;  %v3106_v51 = vld [vmem:[#allocation10 + $0xc0] ss:$8 sps:$4 sm:$0xff]  }
  0xe3   : > { %1042 = vmatpush1.bf16.msra.mxu0 %v3031_v22  ;;  %1327 = vmatpush1.bf16.msra.mxu1 %v3133_v53  ;;  %v3111_v52 = vld [vmem:[#allocation10 + $0xb4] ss:$8 sps:$4 sm:$0xff]   ;;  %v3109_v53 = vld [vmem:[#allocation10 + $0xb0] ss:$8 sps:$4 sm:$0xff]   ;;  %v3199_v5 = vld [vmem:[#allocation11 + $0xa0] ss:$8 sps:$4 sm:$0xff]  }
  0xe4   : > { %1043 = vmatprep.subr.bf16.mxu0 %v3036_v23  ;;  %1328 = vmatprep.subr.bf16.mxu1 %v3141_v54  ;;  %v3114_v54 = vld [vmem:[#allocation10 + $0xa4] ss:$8 sps:$4 sm:$0xff]   ;;  %v3136_v8 = vld [vmem:[#allocation13 + $0x50] ss:$8 sps:$4 sm:$0xff]   ;;  %v3211_v12 = vld [vmem:[#allocation11 + $0x80] ss:$8 sps:$4 sm:$0xff]  }
  0xe5   : > { %s665_s14 = scalar_lea.vmem [#allocation19], %s2615_s3  ;;  %s4128_s20 = sld [smem:[#allocation38_spill]] }
  0xe6   : > { %s2434_s7 = sshll.u32 %s665_s14, 4  ;;  %s2421_s17 = scalar_lea.sflag [#allocation4], %s3944_s11  ;;  %s2435_s7 = int_to_ptr.vmem [resolvable:$true] %s2434_s7 }
  0xe7   : > { %1044 = vmatpush1.bf16.msra.mxu0 %v3034_v24  ;;  %1329 = vmatpush1.bf16.msra.mxu1 %v3139_v55  ;;  %v3112_v55 = vld [vmem:[#allocation10 + $0xa0] ss:$8 sps:$4 sm:$0xff]   ;;  %s3559_s19 = scalar_lea.vmem %s2435_s7, 64  ;;  %p4129_p9 = scmp.ne.s32.totalorder %s4112_s5, 0 }
  0xe8   : > { %1045 = vmatprep.subr.bf16.mxu0 %v3039_v25  ;;  %1330 = vmatprep.subr.bf16.mxu1 %v3147_v56  ;;  %v3117_v56 = vld [vmem:[#allocation10 + $0x94] ss:$8 sps:$4 sm:$0xff]   ;;  %p3560_p8 = scmp.ne.s32.totalorder %s2435_s7, %s3559_s19  ;;  %s3662_s30 = smov [#allocation19]  }
  0xe9   : > { %s3563_s18 = sshll.u32 %s3662_s30, 4  ;;  %s3564_s18 = int_to_ptr.vmem [resolvable:$false] %s3563_s18 }
  0xea   : > { %p3561_p10 = pnand %p3560_p8, %p4129_p9  ;;  %s3565_s27 = scalar_lea.vmem %s3564_s18, 128 }
  0xeb   : > { %1046 = vmatpush1.bf16.msra.mxu0 %v3037_v26  ;;  %1331 = vmatpush1.bf16.msra.mxu1 %v3145_v57  ;;  %v3115_v57 = vld [vmem:[#allocation10 + $0x90] ss:$8 sps:$4 sm:$0xff]   ;;  %s2432_s25 = scalar_lea.hbm %s4128_s20, %s2822_s8  ;;  %p3566_p3 = scmp.lt.s32.totalorder %s2435_s7, %s3564_s18 }
  0xec   : > { %1047 = vmatprep.subr.bf16.mxu0 %v3042_v27  ;;  %1332 = vmatprep.subr.bf16.mxu1 %v3153_v58  ;;  %v3120_v58 = vld [vmem:[#allocation10 + $0x84] ss:$8 sps:$4 sm:$0xff]   ;;  %p3562_p1 = pneg %p3561_p10  ;;  %p3567_p4 = scmp.lt.s32.totalorder %s3565_s27, %s3559_s19 }
  0xee   : > { %p3568_p0 = por %p3567_p4, %p3566_p3 }
  0xef   : > { %1048 = vmatpush1.bf16.msra.mxu0 %v3040_v28  ;;  %1333 = vmatpush1.bf16.msra.mxu1 %v3151_v59  ;;  %v3073_v28 = vld [vmem:[#allocation10 + $0x70] ss:$8 sps:$4 sm:$0xff]   ;;  %v3118_v59 = vld [vmem:[#allocation10 + $0x80] ss:$8 sps:$4 sm:$0xff]  }
  0xf0   : > { %1049 = vmatprep.subr.bf16.mxu0 %v3045_v29  ;;  %1334 = vmatprep.subr.bf16.mxu1 %v3159_v60  ;;  %v3126_v60 = vld [vmem:[#allocation13 + $0x74] ss:$8 sps:$4 sm:$0xff]   ;;  %p3569_p6 = pnand %p3568_p0, %p3562_p1 }
  0xf3   : > { %1050 = vmatpush2.bf16.msra.mxu0 %v3043_v30  ;;  %1335 = vmatpush1.bf16.msra.mxu1 %v3157_v61  ;;  %v3078_v30 = vld [vmem:[#allocation10 + $0x64] ss:$8 sps:$4 sm:$0xff]  }
  0xf4   : > { %1051 = vmatprep.subr.bf16.mxu0 %v3048_v31  ;;  %1336 = vmatprep.subr.bf16.mxu1 %v3165_v62  ;;  %v3076_v31 = vld [vmem:[#allocation10 + $0x60] ss:$8 sps:$4 sm:$0xff]  }
  0xf7   : > { %1052 = vmatpush2.bf16.msra.mxu0 %v3046_v32  ;;  %1337 = vmatpush1.bf16.msra.mxu1 %v3163_v63  ;;  %v3081_v32 = vld [vmem:[#allocation10 + $0x54] ss:$8 sps:$4 sm:$0xff]   ;;  %v3124_v63 = vld [vmem:[#allocation13 + $0x70] ss:$8 sps:$4 sm:$0xff]  }
  0xf8   : > { %1053 = vmatprep.subr.bf16.mxu0 %v3051_v33  ;;  %1338 = vmatprep.subr.bf16.mxu1 %v3171_v0  ;;  %v3079_v33 = vld [vmem:[#allocation10 + $0x50] ss:$8 sps:$4 sm:$0xff]   ;;  %v3132_v0 = vld [vmem:[#allocation13 + $0x64] ss:$8 sps:$4 sm:$0xff]  }
  0xfb   : > { %1054 = vmatpush2.bf16.msra.mxu0 %v3049_v34  ;;  %1339 = vmatpush2.bf16.msra.mxu1 %v3169_v1  ;;  %v3084_v34 = vld [vmem:[#allocation10 + $0x44] ss:$8 sps:$4 sm:$0xff]  }
  0xfc   : > { %1055 = vmatprep.subr.bf16.mxu0 %v3054_v35  ;;  %1340 = vmatprep.subr.bf16.mxu1 %v3177_v2  ;;  %v3082_v35 = vld [vmem:[#allocation10 + $0x40] ss:$8 sps:$4 sm:$0xff]  }
  0xff   : > { %1056 = vmatpush2.bf16.msra.mxu0 %v3052_v36  ;;  %1341 = vmatpush2.bf16.msra.mxu1 %v3175_v3  ;;  %v3087_v36 = vld [vmem:[#allocation10 + $0x34] ss:$8 sps:$4 sm:$0xff]   ;;  %v3201_v3 = vld [vmem:[#allocation11 + $0xa4] ss:$8 sps:$4 sm:$0xff]  }
 0x100   : > { %1057 = vmatprep.subr.bf16.mxu0 %v3057_v37  ;;  %1342 = vmatprep.subr.bf16.mxu1 %v3183_v4  ;;  %v3085_v37 = vld [vmem:[#allocation10 + $0x30] ss:$8 sps:$4 sm:$0xff]   ;;  %v3130_v4 = vld [vmem:[#allocation13 + $0x60] ss:$8 sps:$4 sm:$0xff]  }
 0x103   : > { %1058 = vmatpush2.bf16.msra.mxu0 %v3055_v38  ;;  %1343 = vmatpush2.bf16.msra.mxu1 %v3181_v6  ;;  %v3090_v38 = vld [vmem:[#allocation10 + $0x24] ss:$8 sps:$4 sm:$0xff]   ;;  %v3138_v6 = vld [vmem:[#allocation13 + $0x54] ss:$8 sps:$4 sm:$0xff]  }
 0x104   : > { %1059 = vmatprep.subr.bf16.mxu0 %v3063_v39  ;;  %1344 = vmatprep.subr.bf16.mxu1 %v3189_v7  ;;  %v3088_v39 = vld [vmem:[#allocation10 + $0x20] ss:$8 sps:$4 sm:$0xff]   ;;  %v3207_v7 = vld [vmem:[#allocation11 + $0x94] ss:$8 sps:$4 sm:$0xff]  }
 0x107   : > { %1060 = vmatpush2.bf16.msra.mxu0 %v3061_v40  ;;  %1345 = vmatpush2.bf16.msra.mxu1 %v3187_v9  ;;  %v3093_v40 = vld [vmem:[#allocation10 + $0x14] ss:$8 sps:$4 sm:$0xff]   ;;  %v3205_v9 = vld [vmem:[#allocation11 + $0x90] ss:$8 sps:$4 sm:$0xff]  }
 0x108   : > { %1061 = vmatprep.subr.bf16.mxu0 %v3069_v43  ;;  %1346 = vmatprep.subr.bf16.mxu1 %v3195_v10  ;;  %v3094_v43 = vld [vmem:[#allocation10] ss:$8 sps:$4 sm:$0xff]   ;;  %v3144_v10 = vld [vmem:[#allocation13 + $0x44] ss:$8 sps:$4 sm:$0xff]  }
 0x10b   : > { %1062 = vmatpush2.bf16.msra.mxu0 %v3067_v44  ;;  %1347 = vmatpush2.bf16.msra.mxu1 %v3193_v13  ;;  %v3099_v44 = vld [vmem:[#allocation10 + $0xf4] ss:$8 sps:$4 sm:$0xff]   ;;  %v3213_v13 = vld [vmem:[#allocation11 + $0x84] ss:$8 sps:$4 sm:$0xff]  }
 0x10c   : > { %1063 = vmatprep.subr.bf16.mxu0 %v3072_v45  ;;  %v3097_v45 = vld [vmem:[#allocation10 + $0xf0] ss:$8 sps:$4 sm:$0xff]   ;;  %1348 = vmatprep.subr.bf16.mxu1 %v3201_v3  ;;  %v3234_v3 = vld [vmem:[#allocation14 + $0x24] ss:$8 sps:$4 sm:$0xff]  }
 0x10f   : > { %1064 = vmatpush2.bf16.msra.mxu0 %v3070_v46  ;;  %v3102_v46 = vld [vmem:[#allocation10 + $0xe4] ss:$8 sps:$4 sm:$0xff]   ;;  %1349 = vmatpush2.bf16.msra.mxu1 %v3199_v5  ;;  %v3237_v5 = vld [vmem:[#allocation14 + $0x14] ss:$8 sps:$4 sm:$0xff]  }
 0x110   : > { %1523 = vmatprep.subr.bf16.mxu0 %v3075_v47  ;;  %v3100_v47 = vld [vmem:[#allocation10 + $0xe0] ss:$8 sps:$4 sm:$0xff]   ;;  %1350 = vmatprep.subr.bf16.mxu1 %v3207_v7  ;;  %v3240_v7 = vld [vmem:[#allocation14 + $0x4] ss:$8 sps:$4 sm:$0xff]  }
 0x113   : > { %1351 = vmatpush2.bf16.msra.mxu1 %v3205_v9  ;;  %v3243_v9 = vld [vmem:[#allocation14 + $0xf4] ss:$8 sps:$4 sm:$0xff]  }
 0x114   : > { %1352 = vmatprep.subr.bf16.mxu1 %v3213_v13  ;;  %v3244_v13 = vld [vmem:[#allocation14 + $0xe0] ss:$8 sps:$4 sm:$0xff]  }
 0x117   : > { %1353 = vmatpush2.bf16.msra.mxu1 %v3211_v12  ;;  %v3246_v12 = vld [vmem:[#allocation14 + $0xe4] ss:$8 sps:$4 sm:$0xff]  }
 0x192   : > { %v771_v17 = vpop.f32.mrf.mxu0 }
 0x193   : > { %v831_v18 = vadd.f32 %v824_v15, %v771_v17  ;;  %v3142_v15 = vld [vmem:[#allocation13 + $0x40] ss:$8 sps:$4 sm:$0xff]   ;;  %v3148_v17 = vld [vmem:[#allocation13 + $0x30] ss:$8 sps:$4 sm:$0xff]  }
 0x194   : > { %v773_v19 = vpop.f32.mrf.mxu0 }
 0x195   : > { %vm833_vm1 = vcmp.gt.f32.partialorder %v831_v18, 0.0  ;;  %v835_v20 = vmul.f32 0.01, %v831_v18  ;;  %v832_v21 = vadd.f32 %v828_v16, %v773_v19  ;;  %v3150_v16 = vld [vmem:[#allocation13 + $0x34] ss:$8 sps:$4 sm:$0xff]  }
 0x196   : > { %v775_v22 = vpop.f32.mrf.mxu0  ;;  %v3154_v19 = vld [vmem:[#allocation13 + $0x20] ss:$8 sps:$4 sm:$0xff]  }
 0x197   : > { %vm834_vm2 = vcmp.gt.f32.partialorder %v832_v21, 0.0  ;;  %v836_v23 = vmul.f32 0.01, %v832_v21  ;;  %v837_v24 = vsel %vm833_vm1, %v831_v18, %v835_v20  ;;  %v3156_v18 = vld [vmem:[#allocation13 + $0x24] ss:$8 sps:$4 sm:$0xff]  }
 0x198   : > { %v776_v25 = vpop.f32.mrf.mxu0  ;;  %v3990_v29 = vpack.c.bf16 %v837_v24, %v837_v24  ;;  %v3162_v20 = vld [vmem:[#allocation13 + $0x14] ss:$8 sps:$4 sm:$0xff]   ;;  %v3168_v22 = vld [vmem:[#allocation13 + $0x4] ss:$8 sps:$4 sm:$0xff]  }
 0x199   : > { %v838_v26 = vsel %vm834_vm2, %v832_v21, %v836_v23  ;;  %v3160_v21 = vld [vmem:[#allocation13 + $0x10] ss:$8 sps:$4 sm:$0xff]   ;;  %v3166_v23 = vld [vmem:[#allocation13] ss:$8 sps:$4 sm:$0xff]   ;;  %v3174_v24 = vld [vmem:[#allocation13 + $0xf4] ss:$8 sps:$4 sm:$0xff]  }
 0x19a   : > { %v840_v27 = vpack.c.bf16 %v838_v26, %v838_v26  ;;  %v3993_v61 = vpop.f32.mrf.mxu1  ;;  %v3172_v25 = vld [vmem:[#allocation13 + $0xf0] ss:$8 sps:$4 sm:$0xff]   ;;  %v3180_v26 = vld [vmem:[#allocation13 + $0xe4] ss:$8 sps:$4 sm:$0xff]  }
 0x19c   : > { %1065 = vmatprep.mubr.bf16.mxu0 %v840_v27  ;;  %v3995_v62 = vpop.f32.mrf.mxu1 }
 0x19d   : > { %1066 = vmatmul.mubr.bf16.vlgmr.msra.gmra.mxu0 %v3990_v29 }
 0x19e   : > { %1524 = vmatpush1.bf16.msra.mxu0 %v3073_v28  ;;  %1555 = vmatprep.mubr.bf16.mxu0 %v840_v27  ;;  %v816_v1 = vpop.f32.mrf.mxu1  ;;  %v3178_v27 = vld [vmem:[#allocation13 + $0xe0] ss:$8 sps:$4 sm:$0xff]   ;;  %v3186_v28 = vld [vmem:[#allocation13 + $0xd4] ss:$8 sps:$4 sm:$0xff]  }
 0x19f   : > { %1525 = vmatprep.subr.bf16.mxu0 %v3078_v30  ;;  %v3192_v30 = vld [vmem:[#allocation13 + $0xc4] ss:$8 sps:$4 sm:$0xff]   ;;  %v3231_v1 = vld [vmem:[#allocation14 + $0x34] ss:$8 sps:$4 sm:$0xff]  }
 0x1a0   : > { %v817_v2 = vpop.f32.mrf.mxu1 }
 0x1a1   : > { %v3229_v2 = vld [vmem:[#allocation14 + $0x30] ss:$8 sps:$4 sm:$0xff]  }
 0x1a2   : > { %1526 = vmatpush1.bf16.msra.mxu0 %v3076_v31  ;;  %v3190_v31 = vld [vmem:[#allocation13 + $0xc0] ss:$8 sps:$4 sm:$0xff]  }
 0x1a3   : > { %1527 = vmatprep.subr.bf16.mxu0 %v3081_v32  ;;  %v3198_v32 = vld [vmem:[#allocation13 + $0xb4] ss:$8 sps:$4 sm:$0xff]  }
 0x1a6   : > { %1528 = vmatpush1.bf16.msra.mxu0 %v3079_v33  ;;  %v3196_v33 = vld [vmem:[#allocation13 + $0xb0] ss:$8 sps:$4 sm:$0xff]  }
 0x1a7   : > { %1529 = vmatprep.subr.bf16.mxu0 %v3084_v34  ;;  %v3204_v34 = vld [vmem:[#allocation13 + $0xa4] ss:$8 sps:$4 sm:$0xff]  }
 0x1aa   : > { %1530 = vmatpush1.bf16.msra.mxu0 %v3082_v35  ;;  %v3202_v35 = vld [vmem:[#allocation13 + $0xa0] ss:$8 sps:$4 sm:$0xff]  }
 0x1ab   : > { %1531 = vmatprep.subr.bf16.mxu0 %v3087_v36  ;;  %v3210_v36 = vld [vmem:[#allocation13 + $0x94] ss:$8 sps:$4 sm:$0xff]  }
 0x1ae   : > { %1532 = vmatpush1.bf16.msra.mxu0 %v3085_v37  ;;  %v3208_v37 = vld [vmem:[#allocation13 + $0x90] ss:$8 sps:$4 sm:$0xff]  }
 0x1af   : > { %1533 = vmatprep.subr.bf16.mxu0 %v3090_v38  ;;  %v3216_v38 = vld [vmem:[#allocation13 + $0x84] ss:$8 sps:$4 sm:$0xff]  }
 0x1b2   : > { %1534 = vmatpush1.bf16.msra.mxu0 %v3088_v39  ;;  %v3214_v39 = vld [vmem:[#allocation13 + $0x80] ss:$8 sps:$4 sm:$0xff]  }
 0x1b3   : > { %1535 = vmatprep.subr.bf16.mxu0 %v3093_v40  ;;  %v3219_v40 = vld [vmem:[#allocation14 + $0x74] ss:$8 sps:$4 sm:$0xff]  }
 0x1b4   : > { %1810 = vmatprep.subr.bf16.mxu1 %v3219_v40 }
 0x1b6   : > { %1536 = vmatpush1.bf16.msra.mxu0 %v3091_v41  ;;  %v1076_v41 = vld [vmem:[%s4064_s6] sm:$0x3] }
 0x1b7   : > { %1537 = vmatprep.subr.bf16.mxu0 %v3096_v42  ;;  %v1081_v42 = vrot.slane %v1076_v41, %v3981_v11 }
 0x1ba   : > { %1538 = vmatpush1.bf16.msra.mxu0 %v3094_v43 }
 0x1bb   : > { %1539 = vmatprep.subr.bf16.mxu0 %v3099_v44 }
 0x1be   : > { %1540 = vmatpush2.bf16.msra.mxu0 %v3097_v45  ;;  %v1085_v45 = vrot.slane %v1076_v41, %v3986_v14 }
 0x1bf   : > { %1541 = vmatprep.subr.bf16.mxu0 %v3102_v46 }
 0x1c2   : > { %1542 = vmatpush2.bf16.msra.mxu0 %v3100_v47 }
 0x1c3   : > { %1543 = vmatprep.subr.bf16.mxu0 %v3105_v48 }
 0x1c6   : > { %1544 = vmatpush2.bf16.msra.mxu0 %v3103_v49 }
 0x1c7   : > { %1545 = vmatprep.subr.bf16.mxu0 %v3108_v50 }
 0x1ca   : > { %1546 = vmatpush2.bf16.msra.mxu0 %v3106_v51 }
 0x1cb   : > { %1547 = vmatprep.subr.bf16.mxu0 %v3111_v52 }
 0x1ce   : > { %1548 = vmatpush2.bf16.msra.mxu0 %v3109_v53 }
 0x1cf   : > { %1549 = vmatprep.subr.bf16.mxu0 %v3114_v54 }
 0x1d2   : > { %1550 = vmatpush2.bf16.msra.mxu0 %v3112_v55 }
 0x1d3   : > { %1551 = vmatprep.subr.bf16.mxu0 %v3117_v56 }
 0x1d6   : > { %1552 = vmatpush2.bf16.msra.mxu0 %v3115_v57  ;;  %v3217_v57 = vld [vmem:[#allocation14 + $0x70] ss:$8 sps:$4 sm:$0xff]  }
 0x1d7   : > { %1553 = vmatprep.subr.bf16.mxu0 %v3120_v58 }
 0x1da   : > { %1554 = vmatpush2.bf16.msra.mxu0 %v3118_v59  ;;  %v3222_v59 = vld [vmem:[#allocation14 + $0x64] ss:$8 sps:$4 sm:$0xff]  }
 0x1db   : > { %2011 = vmatprep.subr.bf16.mxu0 %v3126_v60  ;;  %v3220_v60 = vld [vmem:[#allocation14 + $0x60] ss:$8 sps:$4 sm:$0xff]  }
 0x1dd   : > { %1556 = vmatmul.mubr.bf16.vlgmr.msra.gmra.mxu0 %v3990_v29  ;;  %v3184_v29 = vld [vmem:[#allocation13 + $0xd0] ss:$8 sps:$4 sm:$0xff]  }
 0x1de   : > { %2012 = vmatpush1.bf16.msra.mxu0 %v3124_v63  ;;  %v3228_v63 = vld [vmem:[#allocation14 + $0x44] ss:$8 sps:$4 sm:$0xff]  }
 0x1df   : > { %2013 = vmatprep.subr.bf16.mxu0 %v3132_v0  ;;  %v3226_v0 = vld [vmem:[#allocation14 + $0x40] ss:$8 sps:$4 sm:$0xff]  }
 0x1e2   : > { %2014 = vmatpush1.bf16.msra.mxu0 %v3130_v4  ;;  %v3232_v4 = vld [vmem:[#allocation14 + $0x20] ss:$8 sps:$4 sm:$0xff]  }
 0x1e3   : > { %2015 = vmatprep.subr.bf16.mxu0 %v3138_v6  ;;  %v3235_v6 = vld [vmem:[#allocation14 + $0x10] ss:$8 sps:$4 sm:$0xff]  }
 0x1e6   : > { %2016 = vmatpush1.bf16.msra.mxu0 %v3136_v8  ;;  %v3238_v8 = vld [vmem:[#allocation14] ss:$8 sps:$4 sm:$0xff]  }
 0x1e7   : > { %2017 = vmatprep.subr.bf16.mxu0 %v3144_v10  ;;  %v3241_v10 = vld [vmem:[#allocation14 + $0xf0] ss:$8 sps:$4 sm:$0xff]  }
 0x1ea   : > { %2018 = vmatpush1.bf16.msra.mxu0 %v3142_v15  ;;  %v3249_v15 = vld [vmem:[#allocation14 + $0xd4] ss:$8 sps:$4 sm:$0xff]  }
 0x1eb   : > { %2019 = vmatprep.subr.bf16.mxu0 %v3150_v16  ;;  %v3247_v16 = vld [vmem:[#allocation14 + $0xd0] ss:$8 sps:$4 sm:$0xff]  }
 0x1ee   : > { %2020 = vmatpush1.bf16.msra.mxu0 %v3148_v17  ;;  %v3252_v17 = vld [vmem:[#allocation14 + $0xc4] ss:$8 sps:$4 sm:$0xff]  }
 0x1ef   : > { %2021 = vmatprep.subr.bf16.mxu0 %v3156_v18  ;;  %v3250_v18 = vld [vmem:[#allocation14 + $0xc0] ss:$8 sps:$4 sm:$0xff]  }
 0x1f2   : > { %2022 = vmatpush1.bf16.msra.mxu0 %v3154_v19  ;;  %v3255_v19 = vld [vmem:[#allocation14 + $0xb4] ss:$8 sps:$4 sm:$0xff]  }
 0x1f3   : > { %2023 = vmatprep.subr.bf16.mxu0 %v3162_v20  ;;  %v3253_v20 = vld [vmem:[#allocation14 + $0xb0] ss:$8 sps:$4 sm:$0xff]  }
 0x1f6   : > { %2024 = vmatpush1.bf16.msra.mxu0 %v3160_v21 }
 0x1f7   : > { %2025 = vmatprep.subr.bf16.mxu0 %v3168_v22 }
 0x1fa   : > { %2026 = vmatpush1.bf16.msra.mxu0 %v3166_v23 }
 0x1fb   : > { %2027 = vmatprep.subr.bf16.mxu0 %v3174_v24 }
 0x1fe   : > { %2028 = vmatpush2.bf16.msra.mxu0 %v3172_v25  ;;  %v3258_v25 = vld [vmem:[#allocation14 + $0xa4] ss:$8 sps:$4 sm:$0xff]  }
 0x1ff   : > { %2029 = vmatprep.subr.bf16.mxu0 %v3180_v26  ;;  %v3256_v26 = vld [vmem:[#allocation14 + $0xa0] ss:$8 sps:$4 sm:$0xff]  }
 0x202   : > { %2030 = vmatpush2.bf16.msra.mxu0 %v3178_v27  ;;  %v3261_v27 = vld [vmem:[#allocation14 + $0x94] ss:$8 sps:$4 sm:$0xff]  }
 0x203   : > { %2031 = vmatprep.subr.bf16.mxu0 %v3186_v28  ;;  %v3259_v28 = vld [vmem:[#allocation14 + $0x90] ss:$8 sps:$4 sm:$0xff]  }
 0x206   : > { %2032 = vmatpush2.bf16.msra.mxu0 %v3184_v29  ;;  %v3262_v29 = vld [vmem:[#allocation14 + $0x80] ss:$8 sps:$4 sm:$0xff]  }
 0x207   : > { %2033 = vmatprep.subr.bf16.mxu0 %v3192_v30  ;;  %v3264_v30 = vld [vmem:[#allocation14 + $0x84] ss:$8 sps:$4 sm:$0xff]  }
 0x20a   : > { %2034 = vmatpush2.bf16.msra.mxu0 %v3190_v31  ;;  %v3265_v31 = vld [vmem:[#allocation17 + $0x78] sm:$0xff]  }
 0x20b   : > { %2035 = vmatprep.subr.bf16.mxu0 %v3198_v32  ;;  %v1564_v32 = vld [vmem:[%s4067_s9] sm:$0x3] }
 0x20e   : > { %2036 = vmatpush2.bf16.msra.mxu0 %v3196_v33  ;;  %v1569_v33 = vrot.slane %v1564_v32, %v3981_v11 }
 0x20f   : > { %2037 = vmatprep.subr.bf16.mxu0 %v3204_v34 }
 0x212   : > { %2038 = vmatpush2.bf16.msra.mxu0 %v3202_v35 }
 0x213   : > { %2039 = vmatprep.subr.bf16.mxu0 %v3210_v36 }
 0x216   : > { %2040 = vmatpush2.bf16.msra.mxu0 %v3208_v37  ;;  %v1573_v37 = vrot.slane %v1564_v32, %v3986_v14  ;;  %v3292_v32 = vld [vmem:[#allocation16 + $0x10] sm:$0xff]  }
 0x217   : > { %2041 = vmatprep.subr.bf16.mxu0 %v3216_v38 }
 0x21a   : > { %2042 = vmatpush2.bf16.msra.mxu0 %v3214_v39 }
 0x25d   : > { %v1067_v43 = vpop.f32.mrf.mxu0 }
 0x25e   : > { %v1074_v44 = vadd.f32 %v1067_v43, %v3993_v61  ;;  %v3225_v61 = vld [vmem:[#allocation14 + $0x54] ss:$8 sps:$4 sm:$0xff]  }
 0x25f   : > { %v1069_v46 = vpop.f32.mrf.mxu0 }
 0x260   : > { %v1088_v47 = vadd.f32 %v1081_v42, %v1074_v44  ;;  %v1075_v48 = vadd.f32 %v1069_v46, %v3995_v62  ;;  %v3223_v62 = vld [vmem:[#allocation14 + $0x50] ss:$8 sps:$4 sm:$0xff]  }
 0x261   : > { %v1071_v49 = vpop.f32.mrf.mxu0 }
 0x262   : > { %vm1090_vm3 = vcmp.gt.f32.partialorder %v1088_v47, 0.0  ;;  %v1092_v50 = vmul.f32 0.01, %v1088_v47  ;;  %v1089_v51 = vadd.f32 %v1085_v45, %v1075_v48 }
 0x263   : > { %v1072_v52 = vpop.f32.mrf.mxu0 }
 0x264   : > { %v1093_v53 = vmul.f32 0.01, %v1089_v51  ;;  %vm1091_vm4 = vcmp.gt.f32.partialorder %v1089_v51, 0.0  ;;  %v1094_v54 = vsel %vm1090_vm3, %v1088_v47, %v1092_v50  ;;  %v3266_v52 = vld [vmem:[#allocation17 + $0x38] sm:$0xff]  }
 0x265   : > { %v1096_v58 = vpack.c.bf16 %v1094_v54, %v1094_v54  ;;  %v3267_v54 = vld [vmem:[#allocation17 + $0x70] sm:$0xff]  }
 0x266   : > { %v1095_v55 = vsel %vm1091_vm4, %v1089_v51, %v1093_v53 }
 0x267   : > { %v1097_v56 = vpack.c.bf16 %v1095_v55, %v1095_v55  ;;  %v3268_v55 = vld [vmem:[#allocation17 + $0x30] sm:$0xff]  }
 0x269   : > { %1354 = vmatprep.mubr.bf16.mxu1 %v1097_v56  ;;  %2043 = vmatprep.mubr.bf16.mxu0 %v1097_v56  ;;  %v3269_v56 = vld [vmem:[#allocation17 + $0x68] sm:$0xff]  }
 0x26a   : > { %1355 = vmatmul.mubr.bf16.vlgmr.msra.gmra.mxu1 %v1096_v58  ;;  %2044 = vmatmul.mubr.bf16.vlgmr.msra.gmra.mxu0 %v1096_v58  ;;  %v3271_v58 = vld [vmem:[#allocation17 + $0x60] sm:$0xff]  }
 0x26b   : > { %1811 = vmatpush1.bf16.msra.mxu1 %v3217_v57  ;;  %v3270_v57 = vld [vmem:[#allocation17 + $0x28] sm:$0xff]  }
 0x26c   : > { %1812 = vmatprep.subr.bf16.mxu1 %v3222_v59  ;;  %v3272_v59 = vld [vmem:[#allocation17 + $0x20] sm:$0xff]  }
 0x26f   : > { %1813 = vmatpush1.bf16.msra.mxu1 %v3220_v60  ;;  %v3273_v60 = vld [vmem:[#allocation17 + $0x58] sm:$0xff]  }
 0x270   : > { %1814 = vmatprep.subr.bf16.mxu1 %v3225_v61  ;;  %v3274_v61 = vld [vmem:[#allocation17 + $0x18] sm:$0xff]  }
 0x273   : > { %1815 = vmatpush1.bf16.msra.mxu1 %v3223_v62  ;;  %v3275_v62 = vld [vmem:[#allocation17 + $0x50] sm:$0xff]  }
 0x274   : > { %1816 = vmatprep.subr.bf16.mxu1 %v3228_v63  ;;  %v3276_v63 = vld [vmem:[#allocation17 + $0x10] sm:$0xff]  }
 0x277   : > { %1817 = vmatpush1.bf16.msra.mxu1 %v3226_v0  ;;  %v3277_v0 = vld [vmem:[#allocation17 + $0x48] sm:$0xff]  }
 0x278   : > { %1818 = vmatprep.subr.bf16.mxu1 %v3231_v1  ;;  %v3278_v1 = vld [vmem:[#allocation17 + $0x8] sm:$0xff]  }
 0x27b   : > { %1819 = vmatpush1.bf16.msra.mxu1 %v3229_v2  ;;  %v3279_v2 = vld [vmem:[#allocation17 + $0x40] sm:$0xff]  }
 0x27c   : > { %1820 = vmatprep.subr.bf16.mxu1 %v3234_v3  ;;  %v3280_v3 = vld [vmem:[#allocation17] sm:$0xff]  }
 0x27f   : > { %1821 = vmatpush1.bf16.msra.mxu1 %v3232_v4  ;;  %v3281_v4 = vld [vmem:[#allocation16 + $0x78] sm:$0xff]  }
 0x280   : > { %1822 = vmatprep.subr.bf16.mxu1 %v3237_v5  ;;  %v2052_v5 = vld [vmem:[%s4070_s12] sm:$0x3] }
 0x283   : > { %1823 = vmatpush1.bf16.msra.mxu1 %v3235_v6  ;;  %v2057_v6 = vrot.slane %v2052_v5, %v3981_v11  ;;  %v3283_v11 = vld [vmem:[#allocation16 + $0x70] sm:$0xff]  }
 0x284   : > { %1824 = vmatprep.subr.bf16.mxu1 %v3240_v7 }
 0x287   : > { %1825 = vmatpush1.bf16.msra.mxu1 %v3238_v8 }
 0x288   : > { %1826 = vmatprep.subr.bf16.mxu1 %v3243_v9  ;;  %v2061_v9 = vrot.slane %v2052_v5, %v3986_v14  ;;  %v3284_v14 = vld [vmem:[#allocation16 + $0x30] sm:$0xff]  }
 0x28b   : > { %1827 = vmatpush2.bf16.msra.mxu1 %v3241_v10 }
 0x28c   : > { %1828 = vmatprep.subr.bf16.mxu1 %v3246_v12 }
 0x28f   : > { %1829 = vmatpush2.bf16.msra.mxu1 %v3244_v13 }
 0x290   : > { %1830 = vmatprep.subr.bf16.mxu1 %v3249_v15 }
 0x293   : > { %1831 = vmatpush2.bf16.msra.mxu1 %v3247_v16 }
 0x294   : > { %1832 = vmatprep.subr.bf16.mxu1 %v3252_v17 }
 0x297   : > { %1833 = vmatpush2.bf16.msra.mxu1 %v3250_v18 }
 0x298   : > { %1834 = vmatprep.subr.bf16.mxu1 %v3255_v19 }
 0x29b   : > { %1835 = vmatpush2.bf16.msra.mxu1 %v3253_v20 }
 0x29c   : > { %1836 = vmatprep.subr.bf16.mxu1 %v3258_v25  ;;  %v3285_v25 = vld [vmem:[#allocation16 + $0x68] sm:$0xff]  }
 0x29d   : > { %v1557_v21 = vpop.f32.mrf.mxu0 }
 0x29f   : > { %v1559_v22 = vpop.f32.mrf.mxu0  ;;  %1837 = vmatpush2.bf16.msra.mxu1 %v3256_v26  ;;  %v3286_v26 = vld [vmem:[#allocation16 + $0x28] sm:$0xff]  }
 0x2a0   : > { %1838 = vmatprep.subr.bf16.mxu1 %v3261_v27  ;;  %v3287_v27 = vld [vmem:[#allocation16 + $0x60] sm:$0xff]  }
 0x2a1   : > { %v1561_v23 = vpop.f32.mrf.mxu0 }
 0x2a2   : > { %v3282_v23 = vld [vmem:[#allocation16 + $0x38] sm:$0xff]  }
 0x2a3   : > { %v1562_v24 = vpop.f32.mrf.mxu0  ;;  %1839 = vmatpush2.bf16.msra.mxu1 %v3259_v28  ;;  %v3288_v28 = vld [vmem:[#allocation16 + $0x20] sm:$0xff]  }
 0x2a4   : > { %1840 = vmatprep.subr.bf16.mxu1 %v3264_v30  ;;  %v3290_v30 = vld [vmem:[#allocation16 + $0x18] sm:$0xff]  }
 0x2a7   : > { %1841 = vmatpush2.bf16.msra.mxu1 %v3262_v29  ;;  %v3289_v29 = vld [vmem:[#allocation16 + $0x58] sm:$0xff]  }
 0x2a8   : > { %2825 = vmatprep.subr.bf16.mxu1 %v3265_v31  ;;  %v3291_v31 = vld [vmem:[#allocation16 + $0x50] sm:$0xff]  }
 0x32a   : > { %v1356_v34 = vpop.f32.mrf.mxu1  ;;  %v2045_v35 = vpop.f32.mrf.mxu0 }
 0x32b   : > { %v1558_v36 = vadd.f32 %v1557_v21, %v1356_v34  ;;  %v3294_v34 = vld [vmem:[#allocation16 + $0x8] sm:$0xff]  }
 0x32c   : > { %v1358_v38 = vpop.f32.mrf.mxu1  ;;  %v2047_v39 = vpop.f32.mrf.mxu0 }
 0x32d   : > { %v1576_v40 = vadd.f32 %v1569_v33, %v1558_v36  ;;  %v1560_v41 = vadd.f32 %v1559_v22, %v1358_v38  ;;  %v3293_v33 = vld [vmem:[#allocation16 + $0x48] sm:$0xff]   ;;  %v3296_v36 = vld [vmem:[#allocation16] sm:$0xff]  }
 0x32e   : > { %v1360_v42 = vpop.f32.mrf.mxu1  ;;  %v2049_v43 = vpop.f32.mrf.mxu0 }
 0x32f   : > { %vm1578_vm5 = vcmp.gt.f32.partialorder %v1576_v40, 0.0  ;;  %v1580_v44 = vmul.f32 0.01, %v1576_v40  ;;  %v1577_v45 = vadd.f32 %v1573_v37, %v1560_v41 }
 0x330   : > { %v1361_v46 = vpop.f32.mrf.mxu1  ;;  %v2050_v47 = vpop.f32.mrf.mxu0 }
 0x331   : > { %v1581_v48 = vmul.f32 0.01, %v1577_v45  ;;  %vm1579_vm6 = vcmp.gt.f32.partialorder %v1577_v45, 0.0  ;;  %v1582_v49 = vsel %vm1578_vm5, %v1576_v40, %v1580_v44 }
 0x332   : > { %v4010_v53 = vpack.c.bf16 %v1582_v49, %v1582_v49 }
 0x333   : > { %v1583_v50 = vsel %vm1579_vm6, %v1577_v45, %v1581_v48  ;;  %v2820_v45 = vld [vmem:[%s4073_s15] ss:$0 sm:$0xff] }
 0x334   : > { %v1585_v51 = vpack.c.bf16 %v1583_v50, %v1583_v50 }
 0x336   : > { %1842 = vmatprep.mubr.bf16.mxu1 %v1585_v51 }
 0x337   : > { %1843 = vmatmul.mubr.bf16.vlgmr.msra.gmra.mxu1 %v4010_v53 }
 0x338   : > { %2826 = vmatpush3.bf16.msra.mxu1 %v3266_v52 }
 0x339   : > { %2827 = vmatprep.subr.bf16.mxu1 %v3267_v54 }
 0x33c   : > { %2828 = vmatpush3.bf16.msra.mxu1 %v3268_v55 }
 0x33d   : > { %2829 = vmatprep.subr.bf16.mxu1 %v3269_v56 }
 0x340   : > { %2830 = vmatpush3.bf16.msra.mxu1 %v3270_v57 }
 0x341   : > { %2831 = vmatprep.subr.bf16.mxu1 %v3271_v58 }
 0x344   : > { %2832 = vmatpush3.bf16.msra.mxu1 %v3272_v59 }
 0x345   : > { %2833 = vmatprep.subr.bf16.mxu1 %v3273_v60 }
 0x348   : > { %2834 = vmatpush3.bf16.msra.mxu1 %v3274_v61 }
 0x349   : > { %2835 = vmatprep.subr.bf16.mxu1 %v3275_v62 }
 0x34c   : > { %2836 = vmatpush3.bf16.msra.mxu1 %v3276_v63 }
 0x34d   : > { %2837 = vmatprep.subr.bf16.mxu1 %v3277_v0 }
 0x350   : > { %2838 = vmatpush3.bf16.msra.mxu1 %v3278_v1 }
 0x351   : > { %2839 = vmatprep.subr.bf16.mxu1 %v3279_v2 }
 0x354   : > { %2840 = vmatpush3.bf16.msra.mxu1 %v3280_v3 }
 0x355   : > { %2847 = vmatprep.subr.bf16.mxu1 %v3281_v4 }
 0x3f7   : > { %v1844_v7 = vpop.f32.mrf.mxu1 }
 0x3f8   : > { %v2046_v8 = vadd.f32 %v2045_v35, %v1844_v7  ;;  %v3295_v35 = vld [vmem:[#allocation16 + $0x40] sm:$0xff]  }
 0x3f9   : > { %v1846_v10 = vpop.f32.mrf.mxu1 }
 0x3fa   : > { %v2064_v12 = vadd.f32 %v2057_v6, %v2046_v8  ;;  %v2048_v13 = vadd.f32 %v2047_v39, %v1846_v10 }
 0x3fb   : > { %v1848_v15 = vpop.f32.mrf.mxu1 }
 0x3fc   : > { %vm2066_vm7 = vcmp.gt.f32.partialorder %v2064_v12, 0.0  ;;  %v2068_v16 = vmul.f32 0.01, %v2064_v12  ;;  %v2065_v17 = vadd.f32 %v2061_v9, %v2048_v13 }
 0x3fd   : > { %v1849_v18 = vpop.f32.mrf.mxu1 }
 0x3fe   : > { %v2069_v19 = vmul.f32 0.01, %v2065_v17  ;;  %vm2067_vm8 = vcmp.gt.f32.partialorder %v2065_v17, 0.0  ;;  %v2070_v20 = vsel %vm2066_vm7, %v2064_v12, %v2068_v16 }
 0x3ff   : > { %v2072_v24 = vpack.c.bf16 %v2070_v20, %v2070_v20 }
 0x400   : > { %v2071_v21 = vsel %vm2067_vm8, %v2065_v17, %v2069_v19 }
 0x401   : > { %v2073_v22 = vpack.c.bf16 %v2071_v21, %v2071_v21 }
 0x403   : > { %2266 = vmatprep.mubr.bf16.mxu1 %v2073_v22 }
 0x404   : > { %2267 = vmatmul.mubr.bf16.vlgmr.msra.gmra.mxu1 %v2072_v24 }
 0x405   : > { %2848 = vmatpush3.bf16.msra.mxu1 %v3282_v23  ;;  %2402 = vmatprep.mubr.bf16.mxu1 %v1585_v51 }
 0x406   : > { %2849 = vmatprep.subr.bf16.mxu1 %v3283_v11 }
 0x409   : > { %2850 = vmatpush3.bf16.msra.mxu1 %v3284_v14 }
 0x40a   : > { %2851 = vmatprep.subr.bf16.mxu1 %v3285_v25 }
 0x40d   : > { %2852 = vmatpush3.bf16.msra.mxu1 %v3286_v26 }
 0x40e   : > { %2853 = vmatprep.subr.bf16.mxu1 %v3287_v27 }
 0x411   : > { %2854 = vmatpush3.bf16.msra.mxu1 %v3288_v28 }
 0x412   : > { %2855 = vmatprep.subr.bf16.mxu1 %v3289_v29 }
 0x415   : > { %2856 = vmatpush3.bf16.msra.mxu1 %v3290_v30 }
 0x416   : > { %2857 = vmatprep.subr.bf16.mxu1 %v3291_v31 }
 0x419   : > { %2858 = vmatpush3.bf16.msra.mxu1 %v3292_v32 }
 0x41a   : > { %2859 = vmatprep.subr.bf16.mxu1 %v3293_v33 }
 0x41d   : > { %2860 = vmatpush3.bf16.msra.mxu1 %v3294_v34 }
 0x41e   : > { %2861 = vmatprep.subr.bf16.mxu1 %v3295_v35 }
 0x421   : > { %2862 = vmatpush3.bf16.msra.mxu1 %v3296_v36 }
 0x424   : > { %2403 = vmatmul.mubr.bf16.vlgmr.msra.gmra.mxu1 %v4010_v53 }
 0x4c4   : > { %v2841_v37 = vpop.f32.mrf.mxu1 }
 0x4c6   : > { %v2842_v38 = vpop.f32.mrf.mxu1 }
 0x4c7   : > { %v2843_v43 = vadd.f32 %v2842_v38, %v2841_v37 }
 0x4c8   : > { %v2844_v39 = vpop.f32.mrf.mxu1 }
 0x4ca   : > { %v2845_v40 = vpop.f32.mrf.mxu1 }
 0x4e4   : > { %v2863_v41 = vpop.f32.mrf.mxu1 }
 0x4e6   : > { %v2864_v42 = vpop.f32.mrf.mxu1 }
 0x4e7   : > { %v2865_v44 = vadd.f32 %v2864_v42, %v2863_v41 }
 0x4e8   : > { %v2866_v46 = vpop.f32.mrf.mxu1 }
 0x4e9   : > { %v2405_v47 = vadd.f32 %v2865_v44, %v2843_v43 }
 0x4ea   : > { %v2867_v48 = vpop.f32.mrf.mxu1 }
 0x4eb   : > { %v2417_v49 = vadd.f32 %v2820_v45, %v2405_v47 }
 0x4ed   : > { %v2418_v50 = vpack.c.bf16 %v2417_v49, %v2417_v49 }
 0x4ef   : > { %2419 = vst [vmem:[%s665_s14] sm:$0xf] %v2418_v50 }
 0x4f0   : > { %3572 = shalt.err (!%p3569_p6)
}
 0x4f1   : > { %s3573_s16 = scalar_lea.hbm %s2432_s25, 64  ;;  %s3577_s26 = scalar_lea.hbm %s4128_s20, 128 }
 0x4f2   : > { %p3574_p5 = scmp.ne.s32.totalorder %s2432_s25, %s3573_s16  ;;  %p3578_p12 = scmp.lt.s32.totalorder %s2432_s25, %s4128_s20 }
 0x4f3   : > { %p3579_p13 = scmp.lt.s32.totalorder %s3577_s26, %s3573_s16 }
 0x4f4   : > { %p3575_p7 = pnand %p3574_p5, %p4129_p9 }
 0x4f5   : > { %p3580_p2 = por %p3579_p13, %p3578_p12 }
 0x4f6   : > { %p3576_p11 = pneg %p3575_p7 }
 0x4f8   : > { %p3581_p8 = pnand %p3580_p2, %p3576_p11 }
 0x4fa   : > { %3584 = shalt.err (!%p3581_p8)
}
 0x4fb   : > { %2907 = dma.vmem_to_hbm [thread:$0]  (%p4129_p9), %s2435_s7, 64, %s2432_s25, %s2421_s17  }
 0x4fc PF: > { %s2446_s14 = sand.u32 1, %s3631_s21   ;;  %p4130_p10 = scmp.ne.s32.totalorder %s4113_s2, 0 }
 0x4fd   : > { %p4131_p1 = scmp.ge.s32.totalorder %s3643_s24, 2  ;;  %s2447_s10 = scalar_lea.sflag [#allocation4], %s2446_s14 }
 0x4ff   : > { %p2942_p3 = pnand %p4131_p1, %p4130_p10 }
 0x501   : > { %p2943_p4 = pneg %p2942_p3 }
 0x503   : > { %3626 = dma.done.wait (%p2943_p4), %s2447_s10, 64  }
 0x504   : > { %3628 = vsyncadd (%p2943_p4), %s2447_s10, 4294967232  ;;  %s4132_s28 = sld [smem:[#allocation27_spill]]  ;;  %p34_p0 = scmp.ge.s32.totalorder %s3887_s0, 4  }
 0x505   : > { %s4133_s21 = smov %s3635_s22  ;;  %s4134_s22 = smov %s3639_s23 }
 0x506   : > { %s4136_s24 = smov %s3887_s0  ;;  %36 = sbr.rel (!%p34_p0) target bundleno = 22 (0x16), region = 165 }
 0x50a   : > { %s4135_s23 = smov %s4132_s28 }
 0x50b   :  { %2452 = vsyncpa [#allocation3], 1 }
 0x50c   :  { %2454 = vsyncpa [#allocation3 + $0x1], 1 }
 0x50d   :  { %2455 = vsyncpa [#allocation6], 1 }
 0x50e   :  { %2456 = vsyncpa [#allocation9], 1 }
 0x50f   :  { %2457 = vsyncpa [#allocation12], 1 }
 0x510   :  { %2458 = vsyncpa [#allocation15], 1 }
 0x511   :  { %2459 = vsyncpa [#allocation18], 1 }
 0x512   :  { %2460 = vsyncpa [#allocation4], 1 }
 0x513   :  { %2462 = vsyncpa [#allocation4 + $0x1], 1 }

</bundles_post_ra>
